<compile_context>
chip_gen: v6e
topology: v6e:2x2x1
jax: 0.10.0
libtpu: 0.0.40
codegen_flags: <defaults>
</compile_context>

<pallas_src>
import functools

import jax
import jax.numpy as jnp
from jax import lax
from jax.experimental import pallas as pl
from jax.experimental.pallas import tpu as pltpu


_LANE = 128
_MAX_ROWS = 1024                      # rows (Bw*N) per grid step
_MAX_BIAS_BYTES = 6 * 1024 * 1024     # cap on the per-step (H, Bm, N, N) f32 bias block


def _window_attn_kernel(x_ref, wqkv_ref, bqkv_ref, bias_ref,
                        wproj_ref, bproj_ref, o_ref, ctx_ref, *,
                        num_heads, bw, n_tok, bias_bm):
    # x_ref:     (Bw*N, C)       bf16  (qk scale folded into wqkv/bqkv)
    # wqkv_ref:  (C, 3C)         bf16
    # bqkv_ref:  (1, 3C)         f32
    # bias_ref:  (H, Bm, N, N)   f32   rel-pos bias (+ shifted-window mask)
    # wproj_ref: (C, Cp)         bf16  Cp = C padded to a multiple of 128 lanes
    # bproj_ref: (1, Cp)         f32
    # o_ref:     (Bw*N, Cp)      out dtype (lane-dense store)
    # ctx_ref:   (Bw, N, C)      bf16 VMEM scratch — per-head context columns
    H = num_heads
    C = wproj_ref.shape[0]
    Dh = C // H
    repeat = bw // bias_bm            # images covered by one bias block per step

    x = x_ref[...]                                                    # (Bw*N, C) bf16

    # Fused qkv projection on the MXU (f32 accumulation), bias add in f32,
    # then ONE bulk bf16 cast (instead of 3*H narrow per-slice casts).
    qkv = jnp.dot(x, wqkv_ref[...],
                  preferred_element_type=jnp.float32) + bqkv_ref[0]   # (Bw*N, 3C) f32
    qkv = qkv.astype(jnp.bfloat16).reshape(bw, n_tok, 3 * C)

    for h in range(H):                                                # static unroll
        q_h = qkv[:, :, h * Dh:(h + 1) * Dh]
        k_h = qkv[:, :, C + h * Dh:C + (h + 1) * Dh]
        v_h = qkv[:, :, 2 * C + h * Dh:2 * C + (h + 1) * Dh]

        # attention logits, batched over Bw windows: (Bw, N, N), f32 accum.
        s = lax.dot_general(q_h, k_h, (((2,), (2,)), ((0,), (0,))),
                            preferred_element_type=jnp.float32)
        # bias block covers bias_bm windows; broadcast over `repeat` images.
        s = (s.reshape(repeat, bias_bm, n_tok, n_tok)
             + bias_ref[h]).reshape(bw, n_tok, n_tok)

        # numerically stable softmax with normalization DEFERRED past P@V:
        # the reciprocal multiply lands on the (Bw, N, Dh) output instead of
        # the (Bw, N, N) probabilities.
        m = jnp.max(s, axis=-1, keepdims=True)
        p = jnp.exp(s - m)
        denom = jnp.sum(p, axis=-1, keepdims=True)

        o_h = lax.dot_general(p.astype(jnp.bfloat16), v_h,
                              (((2,), (1,)), ((0,), (0,))),
                              preferred_element_type=jnp.float32)     # (Bw, N, Dh) f32
        o_h = o_h * pl.reciprocal(denom, approx=True)

        # per-head context straight into a VMEM scratch column slice
        # (no lane-direction concat; per-head buffers freed immediately).
        ctx_ref[:, :, h * Dh:(h + 1) * Dh] = o_h.astype(jnp.bfloat16)

    ctx = ctx_ref[...].reshape(bw * n_tok, C)                         # bf16
    out = jnp.dot(ctx, wproj_ref[...],
                  preferred_element_type=jnp.float32) + bproj_ref[0]  # (Bw*N, Cp) f32
    o_ref[...] = out.astype(o_ref.dtype)                              # lane-dense store


def make_relative_position_index(window_size):
    Wh, Ww = window_size
    coords_h = jnp.arange(Wh)
    coords_w = jnp.arange(Ww)
    coords = jnp.stack(jnp.meshgrid(coords_h, coords_w, indexing='ij'))   # (2, Wh, Ww)
    coords_flatten = coords.reshape(2, -1)                                # (2, Wh*Ww)
    rel = coords_flatten[:, :, None] - coords_flatten[:, None, :]         # (2, N, N)
    rel = jnp.transpose(rel, (1, 2, 0))                                   # (N, N, 2)
    rel = rel.at[:, :, 0].add(Wh - 1)
    rel = rel.at[:, :, 1].add(Ww - 1)
    rel = rel.at[:, :, 0].multiply(2 * Ww - 1)
    return rel.sum(-1)                                                    # (N, N)


def prepare_window_attention(params, window_size, num_heads, mask=None):
    """One-off, x-independent parameter prep. Cache the result per layer.

    Folds the qk scale into the Q columns, combines the relative-position bias
    with the (un-tiled) shifted-window mask into one (H, nW, N, N) tensor, and
    zero-pads the output projection columns to a lane-dense multiple of 128.
    """
    C = params['wqkv_t'].shape[0]
    H = num_heads
    Dh = C // H
    scale = Dh ** (-0.5)
    Wh, Ww = window_size
    N = Wh * Ww

    rel_index = make_relative_position_index(window_size)                 # (N, N)
    rel_bias = params['rel_table'][rel_index.reshape(-1)]                 # (N*N, H)
    rel_bias = rel_bias.reshape(N, N, H).transpose(2, 0, 1)               # (H, N, N)
    rel_bias = rel_bias.astype(jnp.float32)
    if mask is None:
        bias = rel_bias[:, None]                                          # (H, 1, N, N)
    else:
        bias = rel_bias[:, None, :, :] + mask.astype(jnp.float32)[None]   # (H, nW, N, N)

    # fold the qk scale into the Q columns of the qkv projection
    wqkv = params['wqkv_t'].astype(jnp.float32)
    wqkv = wqkv.at[:, :C].multiply(scale)
    bqkv = params['bqkv'].astype(jnp.float32)
    bqkv = bqkv.at[:C].multiply(scale).reshape(1, 3 * C)

    # lane-dense output projection: pad columns to a multiple of 128
    Cp = ((C + _LANE - 1) // _LANE) * _LANE
    wproj = jnp.zeros((C, Cp), jnp.float32).at[:, :C].set(
        params['wproj_t'].astype(jnp.float32))
    bproj = jnp.zeros((1, Cp), jnp.float32).at[0, :C].set(
        params['bproj'].astype(jnp.float32))

    return {
        'wqkv': wqkv.astype(jnp.bfloat16),     # (C, 3C)   bf16
        'bqkv': bqkv,                          # (1, 3C)   f32
        'bias': bias,                          # (H, nW|1, N, N) f32
        'wproj': wproj.astype(jnp.bfloat16),   # (C, Cp)   bf16
        'bproj': bproj,                        # (1, Cp)   f32
    }


def _pick_bw(B_, N, nWb, H):
    """Choose windows-per-step Bw and the bias block width Bm.

    Constraints: Bw divides B_; the (Bw*N, C) block obeys the sublane rule;
    the bias block is expressible without wrapper tiling (Bw % nW == 0 -> the
    whole mask is presented and broadcast in-kernel, or nW % Bw == 0 -> the
    index_map slices the mask); per-step rows / bias bytes stay under caps.
    Preference: even grid >= 4 (v7x: 2 TCs, >=2 pipelined steps each), then
    grid >= 2, then the largest Bw (amortize per-step overhead, fill MXU M).
    """
    def bias_bm(bw):
        if nWb == 1:
            return 1
        if bw % nWb == 0:
            return nWb
        if nWb % bw == 0:
            return bw
        return None

    cands = []
    for bw in range(1, B_ + 1):
        if B_ % bw:
            continue
        bm = bias_bm(bw)
        if bm is None:
            continue
        if (bw * N) % 8 != 0 and bw != B_:
            continue
        cands.append((bw, bm))
    # bw == B_ always qualifies, so cands is never empty.
    fits = [(bw, bm) for bw, bm in cands
            if bw * N <= _MAX_ROWS and H * bm * N * N * 4 <= _MAX_BIAS_BYTES]
    pool = fits if fits else [min(cands, key=lambda t: t[0])]

    def pref(t):
        g = B_ // t[0]
        return (g >= 4 and g % 2 == 0, g >= 2, t[0])
    return max(pool, key=pref)


def window_attention_apply(x, prep, num_heads, out_dtype=None):
    """x: (B_, N, C), B_ = batch * nW ordered image-major with window fastest
    (the window_partition layout — the mask is applied per window index % nW).
    Returns (B_, N, C) in out_dtype (default x.dtype; pass jnp.bfloat16 to
    halve HBM writeback, useful on v5e)."""
    B_, N, C = x.shape
    H = num_heads
    Dh = C // H
    nWb = prep['bias'].shape[1]
    Cp = prep['wproj'].shape[1]
    out_dtype = x.dtype if out_dtype is None else out_dtype

    Bw, Bm = _pick_bw(B_, N, nWb, H)
    rows = Bw * N
    grid = B_ // Bw
    n_bias_blocks = nWb // Bm

    x_bf = x.reshape(B_ * N, C).astype(jnp.bfloat16)

    kernel = functools.partial(_window_attn_kernel, num_heads=H, bw=Bw,
                               n_tok=N, bias_bm=Bm)

    flops = (2 * B_ * N * C * 3 * C          # qkv projection
             + 4 * B_ * H * N * N * Dh       # q@k^T and attn@v
             + 2 * B_ * N * C * Cp)          # output projection (padded)
    bytes_accessed = (x_bf.size * 2 + B_ * N * Cp * jnp.dtype(out_dtype).itemsize
                      + prep['wqkv'].size * 2 + prep['wproj'].size * 2
                      + prep['bias'].size * 4 + prep['bqkv'].size * 4
                      + prep['bproj'].size * 4)
    cost = pl.CostEstimate(flops=int(flops), transcendentals=int(B_ * H * N * N),
                           bytes_accessed=int(bytes_accessed))

    out = pl.pallas_call(
        kernel,
        out_shape=jax.ShapeDtypeStruct((B_ * N, Cp), out_dtype),
        grid_spec=pltpu.PrefetchScalarGridSpec(
            num_scalar_prefetch=0,
            grid=(grid,),
            in_specs=[
                pl.BlockSpec((rows, C), lambda b: (b, 0)),                  # x (bf16)
                pl.BlockSpec((C, 3 * C), lambda b: (0, 0)),                 # wqkv
                pl.BlockSpec((1, 3 * C), lambda b: (0, 0)),                 # bqkv
                pl.BlockSpec((H, Bm, N, N),
                             lambda b, m=n_bias_blocks: (0, b % m, 0, 0)),  # bias(+mask)
                pl.BlockSpec((C, Cp), lambda b: (0, 0)),                    # wproj
                pl.BlockSpec((1, Cp), lambda b: (0, 0)),                    # bproj
            ],
            out_specs=pl.BlockSpec((rows, Cp), lambda b: (b, 0)),
            scratch_shapes=[pltpu.VMEM((Bw, N, C), jnp.bfloat16)],          # ctx
        ),
        compiler_params=pltpu.CompilerParams(
            dimension_semantics=("parallel",),
            vmem_limit_bytes=32 * 1024 * 1024),
        cost_estimate=cost,
    )(x_bf, prep['wqkv'], prep['bqkv'], prep['bias'], prep['wproj'], prep['bproj'])

    if Cp != C:
        out = out[:, :C]                      # drop lane padding outside the kernel
    return out.reshape(B_, N, C)


def window_attention(x, params, window_size, num_heads, mask=None, out_dtype=None):
    """Convenience wrapper: prep + apply. In a real model, cache the prep."""
    prep = prepare_window_attention(params, window_size, num_heads, mask)
    return window_attention_apply(x, prep, num_heads, out_dtype)


def window_attention_reference(x, params, window_size, num_heads, mask=None):
    """Pure-JAX f32 reference mirroring the PyTorch forward (dropout p=0)."""
    B_, N, C = x.shape
    H = num_heads
    Dh = C // H
    scale = Dh ** (-0.5)

    qkv = x @ params['wqkv_t'] + params['bqkv']                           # (B_, N, 3C)
    qkv = qkv.reshape(B_, N, 3, H, Dh).transpose(2, 0, 3, 1, 4)           # (3, B_, H, N, Dh)
    q, k, v = qkv[0], qkv[1], qkv[2]
    q = q * scale
    attn = jnp.einsum('bhnd,bhmd->bhnm', q, k)                            # (B_, H, N, N)

    rel_index = make_relative_position_index(window_size)
    rel_bias = params['rel_table'][rel_index.reshape(-1)].reshape(N, N, H)
    rel_bias = rel_bias.transpose(2, 0, 1)                                # (H, N, N)
    attn = attn + rel_bias[None]

    if mask is not None:
        nW = mask.shape[0]
        attn = attn.reshape(B_ // nW, nW, H, N, N) + mask[None, :, None]
        attn = attn.reshape(B_, H, N, N)

    attn = jax.nn.softmax(attn, axis=-1)
    out = jnp.einsum('bhnm,bhmd->bhnd', attn, v)                          # (B_, H, N, Dh)
    out = out.transpose(0, 2, 1, 3).reshape(B_, N, C)
    out = out @ params['wproj_t'] + params['bproj']
    return out


def init_params(key, dim, window_size, num_heads):
    Wh, Ww = window_size
    k1, k2, k3, k4, k5 = jax.random.split(key, 5)
    table_len = (2 * Wh - 1) * (2 * Ww - 1)
    params = {
        # trunc_normal_(std=0.02)
        'rel_table': 0.02 * jax.random.truncated_normal(
            k1, -2.0, 2.0, (table_len, num_heads), jnp.float32),
        # nn.Linear(dim, 3*dim): weight (3C, C); we store its transpose (C, 3C)
        'wqkv_t': 0.05 * jax.random.normal(k2, (dim, 3 * dim), jnp.float32),
        'bqkv': 0.01 * jax.random.normal(k3, (3 * dim,), jnp.float32),
        # nn.Linear(dim, dim): stored transposed (C, C)
        'wproj_t': 0.05 * jax.random.normal(k4, (dim, dim), jnp.float32),
        'bproj': 0.01 * jax.random.normal(k5, (dim,), jnp.float32),
    }
    return params


if __name__ == "__main__":
    # small, module-consistent shapes
    dim = 32
    num_heads = 4
    window_size = (8, 8)
    N = window_size[0] * window_size[1]     # 64 tokens per window
    nW = 2                                  # windows per image
    B = 2                                   # images
    B_ = nW * B                             # (num_windows * B, N, C)

    key = jax.random.PRNGKey(0)
    kx, km, kp = jax.random.split(key, 3)

    x = jax.random.normal(kx, (B_, N, dim), jnp.float32)

    # synthetic shifted-window 0/-inf-style mask: (nW, N, N)
    mask_pattern = (jax.random.uniform(km, (nW, N, N)) > 0.8).astype(jnp.float32)
    mask = mask_pattern * (-100.0)

    params = init_params(kp, dim, window_size, num_heads)

    # one-off prep (cache this per layer); the forward uses only prepared tensors.
    prep = prepare_window_attention(params, window_size, num_heads, mask=mask)
    out = jax.block_until_ready(window_attention_apply(x, prep, num_heads))

    ref = window_attention_reference(x, params, window_size, num_heads, mask=mask)
    assert out.shape == (B_, N, dim)
    # bf16 MXU operands + approx reciprocal -> ~1e-3 level error vs f32 ref
    assert jnp.allclose(out, ref, atol=2e-2, rtol=2e-2), "mismatch vs reference"

    # also exercise the mask=None path (and the convenience wrapper)
    prep_nm = prepare_window_attention(params, window_size, num_heads, mask=None)
    out_nm = jax.block_until_ready(window_attention_apply(x, prep_nm, num_heads))
    ref_nm = window_attention_reference(x, params, window_size, num_heads, mask=None)
    assert jnp.allclose(out_nm, ref_nm, atol=2e-2, rtol=2e-2), "mismatch (no mask)"

    # TODO(synk): attn_drop / proj_drop are p=0.0 in the module default (eval path); dropout not implemented.
    print("KERNEL_OK")
</pallas_src>

<mosaic_0001>
module attributes {stable_mosaic.version = 11 : i64} {
  func.func @_window_attn_kernel(%arg0: i32, %arg1: memref<64x32xbf16, #tpu.memory_space<vmem>>, %arg2: memref<32x96xbf16, #tpu.memory_space<vmem>>, %arg3: memref<1x96xf32, #tpu.memory_space<vmem>>, %arg4: memref<4x1x64x64xf32, #tpu.memory_space<vmem>>, %arg5: memref<32x128xbf16, #tpu.memory_space<vmem>>, %arg6: memref<1x128xf32, #tpu.memory_space<vmem>>, %arg7: memref<64x128xf32, #tpu.memory_space<vmem>>, %arg8: memref<1x64x32xbf16, #tpu.memory_space<vmem>>) attributes {dimension_semantics = [#tpu.dimension_semantics<parallel>], iteration_bounds = array<i64: 4>, scalar_prefetch = 0 : i64, scratch_operands = 1 : i64, tpu.core_type = #tpu.core_type<tc>, window_params = [{transform_indices = @transform_0, window_bounds = array<i64: 64, 32>}, {pipeline_mode = #tpu.pipeline_mode<synchronous>, transform_indices = @transform_1, window_bounds = array<i64: 32, 96>}, {pipeline_mode = #tpu.pipeline_mode<synchronous>, transform_indices = @transform_2, window_bounds = array<i64: 1, 96>}, {transform_indices = @transform_3, window_bounds = array<i64: 4, 1, 64, 64>}, {pipeline_mode = #tpu.pipeline_mode<synchronous>, transform_indices = @transform_4, window_bounds = array<i64: 32, 128>}, {pipeline_mode = #tpu.pipeline_mode<synchronous>, transform_indices = @transform_5, window_bounds = array<i64: 1, 128>}, {transform_indices = @transform_6, window_bounds = array<i64: 64, 128>}]} {
    %c0 = arith.constant 0 : index
    %c0_0 = arith.constant 0 : index
    %0 = vector.load %arg1[%c0, %c0_0] : memref<64x32xbf16, #tpu.memory_space<vmem>>, vector<64x32xbf16>
    %c0_1 = arith.constant 0 : index
    %c0_2 = arith.constant 0 : index
    %1 = vector.load %arg2[%c0_1, %c0_2] : memref<32x96xbf16, #tpu.memory_space<vmem>>, vector<32x96xbf16>
    %cst = arith.constant dense<0.000000e+00> : vector<64x96xf32>
    %2 = tpu.matmul %0, %1, %cst {dimension_numbers = #tpu.dot_dimension_numbers<[1], [0], [0], [1], [0, 0, 1, 1], [], []>} : vector<64x32xbf16>, vector<32x96xbf16>, vector<64x96xf32> -> vector<64x96xf32>
    %c0_3 = arith.constant 0 : index
    %c0_4 = arith.constant 0 : index
    %3 = vector.load %arg3[%c0_3, %c0_4] : memref<1x96xf32, #tpu.memory_space<vmem>>, vector<1x96xf32>
    %4 = vector.shape_cast %3 : vector<1x96xf32> to vector<96xf32>
    %5 = vector.shape_cast %4 : vector<96xf32> to vector<1x96xf32>
    %6 = vector.broadcast %5 : vector<1x96xf32> to vector<64x96xf32>
    %7 = arith.addf %2, %6 : vector<64x96xf32>
    %8 = arith.truncf %7 : vector<64x96xf32> to vector<64x96xbf16>
    %9 = vector.shape_cast %8 : vector<64x96xbf16> to vector<1x64x96xbf16>
    %10 = vector.extract_strided_slice %9 {offsets = [0, 0, 0], sizes = [1, 64, 8], strides = [1, 1, 1]} : vector<1x64x96xbf16> to vector<1x64x8xbf16>
    %11 = vector.extract_strided_slice %9 {offsets = [0, 0, 32], sizes = [1, 64, 8], strides = [1, 1, 1]} : vector<1x64x96xbf16> to vector<1x64x8xbf16>
    %12 = vector.extract_strided_slice %9 {offsets = [0, 0, 64], sizes = [1, 64, 8], strides = [1, 1, 1]} : vector<1x64x96xbf16> to vector<1x64x8xbf16>
    %cst_5 = arith.constant dense<0.000000e+00> : vector<1x64x64xf32>
    %13 = tpu.matmul %10, %11, %cst_5 {dimension_numbers = #tpu.dot_dimension_numbers<[2], [2], [1], [1], [0, 0, 0, 1, 1, 1], [0], [0]>} : vector<1x64x8xbf16>, vector<1x64x8xbf16>, vector<1x64x64xf32> -> vector<1x64x64xf32>
    %14 = vector.shape_cast %13 : vector<1x64x64xf32> to vector<1x1x64x64xf32>
    %c0_6 = arith.constant 0 : index
    %c0_7 = arith.constant 0 : index
    %c0_8 = arith.constant 0 : index
    %c0_9 = arith.constant 0 : index
    %15 = vector.load %arg4[%c0_6, %c0_7, %c0_8, %c0_9] : memref<4x1x64x64xf32, #tpu.memory_space<vmem>>, vector<1x1x64x64xf32>
    %16 = vector.shape_cast %15 : vector<1x1x64x64xf32> to vector<1x64x64xf32>
    %17 = vector.shape_cast %16 : vector<1x64x64xf32> to vector<1x1x64x64xf32>
    %18 = arith.addf %14, %17 : vector<1x1x64x64xf32>
    %19 = vector.shape_cast %18 : vector<1x1x64x64xf32> to vector<1x64x64xf32>
    %cst_10 = arith.constant dense<0xFF800000> : vector<1x64xf32>
    %20 = vector.multi_reduction <maximumf>, %19, %cst_10 [2] : vector<1x64x64xf32> to vector<1x64xf32>
    %21 = vector.shape_cast %20 : vector<1x64xf32> to vector<1x64x1xf32>
    %22 = vector.broadcast %21 : vector<1x64x1xf32> to vector<1x64x64xf32>
    %23 = arith.subf %19, %22 : vector<1x64x64xf32>
    %24 = math.exp %23 : vector<1x64x64xf32>
    %cst_11 = arith.constant dense<0.000000e+00> : vector<1x64xf32>
    %25 = vector.multi_reduction <add>, %24, %cst_11 [2] : vector<1x64x64xf32> to vector<1x64xf32>
    %26 = vector.shape_cast %25 : vector<1x64xf32> to vector<1x64x1xf32>
    %27 = arith.truncf %24 : vector<1x64x64xf32> to vector<1x64x64xbf16>
    %cst_12 = arith.constant dense<0.000000e+00> : vector<1x64x8xf32>
    %28 = tpu.matmul %27, %12, %cst_12 {dimension_numbers = #tpu.dot_dimension_numbers<[2], [1], [1], [2], [0, 0, 0, 1, 1, 2], [0], [0]>} : vector<1x64x64xbf16>, vector<1x64x8xbf16>, vector<1x64x8xf32> -> vector<1x64x8xf32>
    %29 = tpu.reciprocal %26 {approx = true} : vector<1x64x1xf32> -> vector<1x64x1xf32>
    %30 = vector.broadcast %29 : vector<1x64x1xf32> to vector<1x64x8xf32>
    %31 = arith.mulf %28, %30 : vector<1x64x8xf32>
    %32 = arith.truncf %31 : vector<1x64x8xf32> to vector<1x64x8xbf16>
    %c0_13 = arith.constant 0 : index
    %c0_14 = arith.constant 0 : index
    %c0_15 = arith.constant 0 : index
    %33 = vector.load %arg8[%c0_13, %c0_14, %c0_15] : memref<1x64x32xbf16, #tpu.memory_space<vmem>>, vector<1x64x8xbf16>
    tpu.vector_store %arg8[%c0_13, %c0_14, %c0_15], %32 {strides = array<i32>} : memref<1x64x32xbf16, #tpu.memory_space<vmem>>, vector<1x64x8xbf16>,
    %34 = vector.extract_strided_slice %9 {offsets = [0, 0, 8], sizes = [1, 64, 8], strides = [1, 1, 1]} : vector<1x64x96xbf16> to vector<1x64x8xbf16>
    %35 = vector.extract_strided_slice %9 {offsets = [0, 0, 40], sizes = [1, 64, 8], strides = [1, 1, 1]} : vector<1x64x96xbf16> to vector<1x64x8xbf16>
    %36 = vector.extract_strided_slice %9 {offsets = [0, 0, 72], sizes = [1, 64, 8], strides = [1, 1, 1]} : vector<1x64x96xbf16> to vector<1x64x8xbf16>
    %cst_16 = arith.constant dense<0.000000e+00> : vector<1x64x64xf32>
    %37 = tpu.matmul %34, %35, %cst_16 {dimension_numbers = #tpu.dot_dimension_numbers<[2], [2], [1], [1], [0, 0, 0, 1, 1, 1], [0], [0]>} : vector<1x64x8xbf16>, vector<1x64x8xbf16>, vector<1x64x64xf32> -> vector<1x64x64xf32>
    %38 = vector.shape_cast %37 : vector<1x64x64xf32> to vector<1x1x64x64xf32>
    %c1 = arith.constant 1 : index
    %c0_17 = arith.constant 0 : index
    %c0_18 = arith.constant 0 : index
    %c0_19 = arith.constant 0 : index
    %39 = vector.load %arg4[%c1, %c0_17, %c0_18, %c0_19] : memref<4x1x64x64xf32, #tpu.memory_space<vmem>>, vector<1x1x64x64xf32>
    %40 = vector.shape_cast %39 : vector<1x1x64x64xf32> to vector<1x64x64xf32>
    %41 = vector.shape_cast %40 : vector<1x64x64xf32> to vector<1x1x64x64xf32>
    %42 = arith.addf %38, %41 : vector<1x1x64x64xf32>
    %43 = vector.shape_cast %42 : vector<1x1x64x64xf32> to vector<1x64x64xf32>
    %cst_20 = arith.constant dense<0xFF800000> : vector<1x64xf32>
    %44 = vector.multi_reduction <maximumf>, %43, %cst_20 [2] : vector<1x64x64xf32> to vector<1x64xf32>
    %45 = vector.shape_cast %44 : vector<1x64xf32> to vector<1x64x1xf32>
    %46 = vector.broadcast %45 : vector<1x64x1xf32> to vector<1x64x64xf32>
    %47 = arith.subf %43, %46 : vector<1x64x64xf32>
    %48 = math.exp %47 : vector<1x64x64xf32>
    %cst_21 = arith.constant dense<0.000000e+00> : vector<1x64xf32>
    %49 = vector.multi_reduction <add>, %48, %cst_21 [2] : vector<1x64x64xf32> to vector<1x64xf32>
    %50 = vector.shape_cast %49 : vector<1x64xf32> to vector<1x64x1xf32>
    %51 = arith.truncf %48 : vector<1x64x64xf32> to vector<1x64x64xbf16>
    %cst_22 = arith.constant dense<0.000000e+00> : vector<1x64x8xf32>
    %52 = tpu.matmul %51, %36, %cst_22 {dimension_numbers = #tpu.dot_dimension_numbers<[2], [1], [1], [2], [0, 0, 0, 1, 1, 2], [0], [0]>} : vector<1x64x64xbf16>, vector<1x64x8xbf16>, vector<1x64x8xf32> -> vector<1x64x8xf32>
    %53 = tpu.reciprocal %50 {approx = true} : vector<1x64x1xf32> -> vector<1x64x1xf32>
    %54 = vector.broadcast %53 : vector<1x64x1xf32> to vector<1x64x8xf32>
    %55 = arith.mulf %52, %54 : vector<1x64x8xf32>
    %56 = arith.truncf %55 : vector<1x64x8xf32> to vector<1x64x8xbf16>
    %c0_23 = arith.constant 0 : index
    %c0_24 = arith.constant 0 : index
    %c8 = arith.constant 8 : index
    %57 = vector.load %arg8[%c0_23, %c0_24, %c8] : memref<1x64x32xbf16, #tpu.memory_space<vmem>>, vector<1x64x8xbf16>
    tpu.vector_store %arg8[%c0_23, %c0_24, %c8], %56 {strides = array<i32>} : memref<1x64x32xbf16, #tpu.memory_space<vmem>>, vector<1x64x8xbf16>,
    %58 = vector.extract_strided_slice %9 {offsets = [0, 0, 16], sizes = [1, 64, 8], strides = [1, 1, 1]} : vector<1x64x96xbf16> to vector<1x64x8xbf16>
    %59 = vector.extract_strided_slice %9 {offsets = [0, 0, 48], sizes = [1, 64, 8], strides = [1, 1, 1]} : vector<1x64x96xbf16> to vector<1x64x8xbf16>
    %60 = vector.extract_strided_slice %9 {offsets = [0, 0, 80], sizes = [1, 64, 8], strides = [1, 1, 1]} : vector<1x64x96xbf16> to vector<1x64x8xbf16>
    %cst_25 = arith.constant dense<0.000000e+00> : vector<1x64x64xf32>
    %61 = tpu.matmul %58, %59, %cst_25 {dimension_numbers = #tpu.dot_dimension_numbers<[2], [2], [1], [1], [0, 0, 0, 1, 1, 1], [0], [0]>} : vector<1x64x8xbf16>, vector<1x64x8xbf16>, vector<1x64x64xf32> -> vector<1x64x64xf32>
    %62 = vector.shape_cast %61 : vector<1x64x64xf32> to vector<1x1x64x64xf32>
    %c2 = arith.constant 2 : index
    %c0_26 = arith.constant 0 : index
    %c0_27 = arith.constant 0 : index
    %c0_28 = arith.constant 0 : index
    %63 = vector.load %arg4[%c2, %c0_26, %c0_27, %c0_28] : memref<4x1x64x64xf32, #tpu.memory_space<vmem>>, vector<1x1x64x64xf32>
    %64 = vector.shape_cast %63 : vector<1x1x64x64xf32> to vector<1x64x64xf32>
    %65 = vector.shape_cast %64 : vector<1x64x64xf32> to vector<1x1x64x64xf32>
    %66 = arith.addf %62, %65 : vector<1x1x64x64xf32>
    %67 = vector.shape_cast %66 : vector<1x1x64x64xf32> to vector<1x64x64xf32>
    %cst_29 = arith.constant dense<0xFF800000> : vector<1x64xf32>
    %68 = vector.multi_reduction <maximumf>, %67, %cst_29 [2] : vector<1x64x64xf32> to vector<1x64xf32>
    %69 = vector.shape_cast %68 : vector<1x64xf32> to vector<1x64x1xf32>
    %70 = vector.broadcast %69 : vector<1x64x1xf32> to vector<1x64x64xf32>
    %71 = arith.subf %67, %70 : vector<1x64x64xf32>
    %72 = math.exp %71 : vector<1x64x64xf32>
    %cst_30 = arith.constant dense<0.000000e+00> : vector<1x64xf32>
    %73 = vector.multi_reduction <add>, %72, %cst_30 [2] : vector<1x64x64xf32> to vector<1x64xf32>
    %74 = vector.shape_cast %73 : vector<1x64xf32> to vector<1x64x1xf32>
    %75 = arith.truncf %72 : vector<1x64x64xf32> to vector<1x64x64xbf16>
    %cst_31 = arith.constant dense<0.000000e+00> : vector<1x64x8xf32>
    %76 = tpu.matmul %75, %60, %cst_31 {dimension_numbers = #tpu.dot_dimension_numbers<[2], [1], [1], [2], [0, 0, 0, 1, 1, 2], [0], [0]>} : vector<1x64x64xbf16>, vector<1x64x8xbf16>, vector<1x64x8xf32> -> vector<1x64x8xf32>
    %77 = tpu.reciprocal %74 {approx = true} : vector<1x64x1xf32> -> vector<1x64x1xf32>
    %78 = vector.broadcast %77 : vector<1x64x1xf32> to vector<1x64x8xf32>
    %79 = arith.mulf %76, %78 : vector<1x64x8xf32>
    %80 = arith.truncf %79 : vector<1x64x8xf32> to vector<1x64x8xbf16>
    %c0_32 = arith.constant 0 : index
    %c0_33 = arith.constant 0 : index
    %c16 = arith.constant 16 : index
    %81 = vector.load %arg8[%c0_32, %c0_33, %c16] : memref<1x64x32xbf16, #tpu.memory_space<vmem>>, vector<1x64x8xbf16>
    tpu.vector_store %arg8[%c0_32, %c0_33, %c16], %80 {strides = array<i32>} : memref<1x64x32xbf16, #tpu.memory_space<vmem>>, vector<1x64x8xbf16>,
    %82 = vector.extract_strided_slice %9 {offsets = [0, 0, 24], sizes = [1, 64, 8], strides = [1, 1, 1]} : vector<1x64x96xbf16> to vector<1x64x8xbf16>
    %83 = vector.extract_strided_slice %9 {offsets = [0, 0, 56], sizes = [1, 64, 8], strides = [1, 1, 1]} : vector<1x64x96xbf16> to vector<1x64x8xbf16>
    %84 = vector.extract_strided_slice %9 {offsets = [0, 0, 88], sizes = [1, 64, 8], strides = [1, 1, 1]} : vector<1x64x96xbf16> to vector<1x64x8xbf16>
    %cst_34 = arith.constant dense<0.000000e+00> : vector<1x64x64xf32>
    %85 = tpu.matmul %82, %83, %cst_34 {dimension_numbers = #tpu.dot_dimension_numbers<[2], [2], [1], [1], [0, 0, 0, 1, 1, 1], [0], [0]>} : vector<1x64x8xbf16>, vector<1x64x8xbf16>, vector<1x64x64xf32> -> vector<1x64x64xf32>
    %86 = vector.shape_cast %85 : vector<1x64x64xf32> to vector<1x1x64x64xf32>
    %c3 = arith.constant 3 : index
    %c0_35 = arith.constant 0 : index
    %c0_36 = arith.constant 0 : index
    %c0_37 = arith.constant 0 : index
    %87 = vector.load %arg4[%c3, %c0_35, %c0_36, %c0_37] : memref<4x1x64x64xf32, #tpu.memory_space<vmem>>, vector<1x1x64x64xf32>
    %88 = vector.shape_cast %87 : vector<1x1x64x64xf32> to vector<1x64x64xf32>
    %89 = vector.shape_cast %88 : vector<1x64x64xf32> to vector<1x1x64x64xf32>
    %90 = arith.addf %86, %89 : vector<1x1x64x64xf32>
    %91 = vector.shape_cast %90 : vector<1x1x64x64xf32> to vector<1x64x64xf32>
    %cst_38 = arith.constant dense<0xFF800000> : vector<1x64xf32>
    %92 = vector.multi_reduction <maximumf>, %91, %cst_38 [2] : vector<1x64x64xf32> to vector<1x64xf32>
    %93 = vector.shape_cast %92 : vector<1x64xf32> to vector<1x64x1xf32>
    %94 = vector.broadcast %93 : vector<1x64x1xf32> to vector<1x64x64xf32>
    %95 = arith.subf %91, %94 : vector<1x64x64xf32>
    %96 = math.exp %95 : vector<1x64x64xf32>
    %cst_39 = arith.constant dense<0.000000e+00> : vector<1x64xf32>
    %97 = vector.multi_reduction <add>, %96, %cst_39 [2] : vector<1x64x64xf32> to vector<1x64xf32>
    %98 = vector.shape_cast %97 : vector<1x64xf32> to vector<1x64x1xf32>
    %99 = arith.truncf %96 : vector<1x64x64xf32> to vector<1x64x64xbf16>
    %cst_40 = arith.constant dense<0.000000e+00> : vector<1x64x8xf32>
    %100 = tpu.matmul %99, %84, %cst_40 {dimension_numbers = #tpu.dot_dimension_numbers<[2], [1], [1], [2], [0, 0, 0, 1, 1, 2], [0], [0]>} : vector<1x64x64xbf16>, vector<1x64x8xbf16>, vector<1x64x8xf32> -> vector<1x64x8xf32>
    %101 = tpu.reciprocal %98 {approx = true} : vector<1x64x1xf32> -> vector<1x64x1xf32>
    %102 = vector.broadcast %101 : vector<1x64x1xf32> to vector<1x64x8xf32>
    %103 = arith.mulf %100, %102 : vector<1x64x8xf32>
    %104 = arith.truncf %103 : vector<1x64x8xf32> to vector<1x64x8xbf16>
    %c0_41 = arith.constant 0 : index
    %c0_42 = arith.constant 0 : index
    %c24 = arith.constant 24 : index
    %105 = vector.load %arg8[%c0_41, %c0_42, %c24] : memref<1x64x32xbf16, #tpu.memory_space<vmem>>, vector<1x64x8xbf16>
    tpu.vector_store %arg8[%c0_41, %c0_42, %c24], %104 {strides = array<i32>} : memref<1x64x32xbf16, #tpu.memory_space<vmem>>, vector<1x64x8xbf16>,
    %c0_43 = arith.constant 0 : index
    %c0_44 = arith.constant 0 : index
    %c0_45 = arith.constant 0 : index
    %106 = vector.load %arg8[%c0_43, %c0_44, %c0_45] : memref<1x64x32xbf16, #tpu.memory_space<vmem>>, vector<1x64x32xbf16>
    %107 = vector.shape_cast %106 : vector<1x64x32xbf16> to vector<64x32xbf16>
    %c0_46 = arith.constant 0 : index
    %c0_47 = arith.constant 0 : index
    %108 = vector.load %arg5[%c0_46, %c0_47] : memref<32x128xbf16, #tpu.memory_space<vmem>>, vector<32x128xbf16>
    %cst_48 = arith.constant dense<0.000000e+00> : vector<64x128xf32>
    %109 = tpu.matmul %107, %108, %cst_48 {dimension_numbers = #tpu.dot_dimension_numbers<[1], [0], [0], [1], [0, 0, 1, 1], [], []>} : vector<64x32xbf16>, vector<32x128xbf16>, vector<64x128xf32> -> vector<64x128xf32>
    %c0_49 = arith.constant 0 : index
    %c0_50 = arith.constant 0 : index
    %110 = vector.load %arg6[%c0_49, %c0_50] : memref<1x128xf32, #tpu.memory_space<vmem>>, vector<1x128xf32>
    %111 = vector.shape_cast %110 : vector<1x128xf32> to vector<128xf32>
    %112 = vector.shape_cast %111 : vector<128xf32> to vector<1x128xf32>
    %113 = vector.broadcast %112 : vector<1x128xf32> to vector<64x128xf32>
    %114 = arith.addf %109, %113 : vector<64x128xf32>
    %c0_51 = arith.constant 0 : index
    %c0_52 = arith.constant 0 : index
    %115 = vector.load %arg7[%c0_51, %c0_52] : memref<64x128xf32, #tpu.memory_space<vmem>>, vector<64x128xf32>
    tpu.vector_store %arg7[%c0_51, %c0_52], %114 {strides = array<i32>} : memref<64x128xf32, #tpu.memory_space<vmem>>, vector<64x128xf32>,
    return
  }
  func.func @transform_0(%arg0: i32) -> (i32, i32) {
    %c0_i32 = arith.constant 0 : i32
    %c0_i32_0 = arith.constant 0 : i32
    return %arg0, %c0_i32 : i32, i32
  }
  func.func @transform_1(%arg0: i32) -> (i32, i32) {
    %c0_i32 = arith.constant 0 : i32
    %c0_i32_0 = arith.constant 0 : i32
    %c0_i32_1 = arith.constant 0 : i32
    return %c0_i32, %c0_i32_0 : i32, i32
  }
  func.func @transform_2(%arg0: i32) -> (i32, i32) {
    %c0_i32 = arith.constant 0 : i32
    %c0_i32_0 = arith.constant 0 : i32
    %c0_i32_1 = arith.constant 0 : i32
    return %c0_i32, %c0_i32_0 : i32, i32
  }
  func.func @transform_3(%arg0: i32) -> (i32, i32, i32, i32) {
    %c2_i32 = arith.constant 2 : i32
    %c0_i32 = arith.constant 0 : i32
    %0 = arith.cmpi eq, %c2_i32, %c0_i32 : i32
    %c1_i32 = arith.constant 1 : i32
    %1 = arith.select %0, %c1_i32, %c2_i32 : i32
    %2 = arith.remsi %arg0, %1 : i32
    %c0_i32_0 = arith.constant 0 : i32
    %3 = arith.cmpi ne, %2, %c0_i32_0 : i32
    %c0_i32_1 = arith.constant 0 : i32
    %4 = arith.cmpi slt, %2, %c0_i32_1 : i32
    %c0_i32_2 = arith.constant 0 : i32
    %5 = arith.cmpi slt, %1, %c0_i32_2 : i32
    %6 = arith.xori %4, %5 : i1
    %7 = arith.andi %6, %3 : i1
    %8 = arith.addi %2, %1 : i32
    %9 = arith.select %7, %8, %2 : i32
    %c0_i32_3 = arith.constant 0 : i32
    %c0_i32_4 = arith.constant 0 : i32
    %c0_i32_5 = arith.constant 0 : i32
    %c0_i32_6 = arith.constant 0 : i32
    return %c0_i32_3, %9, %c0_i32_4, %c0_i32_5 : i32, i32, i32, i32
  }
  func.func @transform_4(%arg0: i32) -> (i32, i32) {
    %c0_i32 = arith.constant 0 : i32
    %c0_i32_0 = arith.constant 0 : i32
    %c0_i32_1 = arith.constant 0 : i32
    return %c0_i32, %c0_i32_0 : i32, i32
  }
  func.func @transform_5(%arg0: i32) -> (i32, i32) {
    %c0_i32 = arith.constant 0 : i32
    %c0_i32_0 = arith.constant 0 : i32
    %c0_i32_1 = arith.constant 0 : i32
    return %c0_i32, %c0_i32_0 : i32, i32
  }
  func.func @transform_6(%arg0: i32) -> (i32, i32) {
    %c0_i32 = arith.constant 0 : i32
    %c0_i32_0 = arith.constant 0 : i32
    return %arg0, %c0_i32 : i32, i32
  }
}

</mosaic_0001>

<bundles_post_ra>
// kernel: tpu_custom_call.1
= control target key start
LH: loop header
LB: loop body
LE: loop exit
PB: predicated region body
PF: predicated region fallthrough
CT: control target
= control target key end

     0   :  { %11 = vsyncpa [#allocation4], 0  ;;  %s3733_s0 = inlined_call_operand.vmem [shape: bf16[256,32], index: 0, kind: input, shape index: {}]   ;;  %s3734_s1 = inlined_call_operand.vmem [shape: bf16[32,96], index: 1, kind: input, shape index: {}]   ;;  %s3735_s2 = inlined_call_operand.vmem [shape: f32[1,96], index: 2, kind: input, shape index: {}]   ;;  %s3736_s3 = inlined_call_operand.hbm [shape: f32[4,2,64,64], index: 3, kind: input, shape index: {}]   ;;  %s3737_s4 = inlined_call_operand.vmem [shape: bf16[32,128], index: 4, kind: input, shape index: {}]   ;;  %s3738_s5 = inlined_call_operand.vmem [shape: f32[1,128], index: 5, kind: input, shape index: {}]   ;;  %s3739_s6 = inlined_call_operand.hbm [shape: f32[256,128], index: 6, kind: output, shape index: {}]  }
   0x1   :  { %13 = vsyncpa [#allocation4 + $0x1], 0 }
   0x2   :  { %14 = vsyncpa [#allocation5], 0 }
   0x3   :  { %16 = vsyncpa [#allocation5 + $0x1], 0  ;;  %s2949_s21 = smov 0   ;;  %s2951_s22 = smov 0  }
   0x4   :  { %s2953_s23 = smov 0   ;;  %s2955_s24 = smov 0  }
   0x5   :  { %s2957_s25 = smov 0   ;;  %s2959_s26 = smov 0  }
   0x6   :  { %s2961_s27 = smov 0  }
   0x7 LB: > { %3742 = sst [smem:[#allocation12_spill]] %s2875_s23  ;;  %s2985_s28 = sadd.s32 4294967295, %s2891_s27   ;;  %s2891_s27 = sphi %s2961_s27, %s3766_s27   ;;  %s2887_s26 = sphi %s2959_s26, %s3761_s26   ;;  %s2883_s25 = sphi %s2957_s25, %s3765_s25   ;;  %s2879_s24 = sphi %s2955_s24, %s3764_s24   ;;  %s2875_s23 = sphi %s2953_s23, %s3759_s23   ;;  %s2871_s22 = sphi %s2951_s22, %s3763_s22   ;;  %s2867_s21 = sphi %s2949_s21, %s3762_s21  }
   0x8   : > { %3743 = sst [smem:[#allocation13_spill]] %s2887_s26  ;;  %s2156_s29 = sadd.s32 4294967294, %s2891_s27  }
   0x9   : > { %s2989_s30 = sadd.s32 1, %s2891_s27   ;;  %p94_p0 = scmp.lt.s32.totalorder %s2891_s27, 0 }
   0xa   : > { %s95_s7 = ssub.s32 0, %s2891_s27  ;;  %p106_p1 = scmp.lt.s32.totalorder %s2989_s30, 0 }
   0xb   : > { %s2157_s8 = smin.u32 %s2891_s27, %s95_s7  ;;  %s107_s9 = ssub.s32 0, %s2989_s30 }
   0xc   : > { %s97_s10 = sand.u32 1, %s2157_s8   ;;  %s2160_s11 = smin.u32 %s107_s9, %s2989_s30 }
   0xd   : > { %s98_s12 = ssub.s32 0, %s97_s10  ;;  %s109_s13 = sand.u32 1, %s2160_s11  }
   0xe   : > { %s3768_s12 = smov (!%p94_p0, %s98_s12), %s97_s10  ;;  %s110_s14 = ssub.s32 0, %s109_s13 }
   0xf   : > { %s121_s15 = sadd.s32 1, %s2887_s26  ;;  %p2159_p2 = scmp.lt.s32.totalorder %s3768_s12, 0 }
  0x10   : > { %s104_s16 = sadd.s32 2, %s3768_s12  ;;  %s3770_s14 = smov (!%p106_p1, %s110_s14), %s109_s13 }
  0x11   : > { %s3772_s16 = smov (!%p2159_p2, %s104_s16), %s3768_s12  ;;  %p2162_p3 = scmp.lt.s32.totalorder %s3770_s14, 0 }
  0x12   : > { %s116_s17 = sadd.s32 2, %s3770_s14  ;;  %p128_p4 = scmp.ne.s32.totalorder %s2887_s26, %s2883_s25 }
  0x13   : > { %p129_p5 = scmp.eq.s32.totalorder %s2891_s27, 0  ;;  %s3774_s17 = smov (!%p2162_p3, %s116_s17), %s3770_s14 }
  0x14   : > { %p134_p7 = scmp.ne.s32.totalorder %s2883_s25, %s2879_s24  ;;  %s118_s19 = ssub.s32 %s3772_s16, %s3774_s17 }
  0x15   : > { %p3003_p6 = por %p129_p5, %p128_p4  ;;  %p135_p8 = scmp.eq.s32.totalorder %s2985_s28, 0 }
  0x16   : > { %p119_p9 = scmp.eq.s32.totalorder %s118_s19, 0  ;;  %s186_s20 = ssub.s32 %s2891_s27, %s2989_s30 }
  0x17   : > { %p3013_p10 = por %p135_p8, %p134_p7  ;;  %p187_p11 = scmp.eq.s32.totalorder %s186_s20, 0 }
  0x18   : > { %s3018_s8 = scalar_select %p119_p9, %s2887_s26, %s121_s15  }
  0x19   : > { %s189_s9 = sadd.s32 1, %s2875_s23  ;;  %p199_p12 = scmp.ne.s32.totalorder %s2875_s23, %s2871_s22 }
  0x1a   : > { %3746 = sst [smem:[#allocation14_spill]] %s3018_s8  ;;  %p200_p13 = scmp.eq.s32.totalorder %s2985_s28, 3 }
  0x1b   : > { %s3024_s10 = scalar_select %p187_p11, %s2875_s23, %s189_s9  }
  0x1c   : > { %p205_p0 = scmp.ne.s32.totalorder %s2871_s22, %s2867_s21  ;;  %p206_p1 = scmp.eq.s32.totalorder %s2156_s29, 3 }
  0x1d   : > { %3747 = sst [smem:[#allocation15_spill]] %s3024_s10  ;;  %p3031_p2 = por %p200_p13, %p199_p12 }
  0x1e   : > { %p3035_p3 = por %p206_p1, %p205_p0  ;;  %p2164_p4 = scmp.ge.s32.totalorder %s2891_s27, 4 }
  0x20   : > { %234 = sbr.rel (%p2164_p4) target bundleno = 50 (0x32), region = 32 }
  0x25   : > { %s247_s12 = sand.u32 1, %s2887_s26   ;;  %s2293_s13 = sshll.u32 %s3772_s16, 10 }
  0x26   : > { %s2165_s29 = sshll.u32 %s247_s12, 8  ;;  %s269_s19 = scalar_lea.hbm %s3736_s3, %s2293_s13 }
  0x27   : > { %s2571_s14 = scalar_select %p3003_p6, [#allocation0], [#allocation9] }
  0x28   : > { %s251_s9 = scalar_lea.vmem [#allocation3], %s2165_s29  ;;  %s2893_s10 = smov 2048  }
  0x29   : > { %s274_s20 = sld [smem:[%s2571_s14]]   ;;  %s282_s8 = sshll.u32 %s251_s9, 4  ;;  %s283_s8 = int_to_ptr.vmem [resolvable:$true] %s282_s8 }
  0x2a   : > { %2572 = sst [smem:[#allocation8]] (%p3003_p6), %s2893_s10  ;;  %s2894_s23 = smov 1024  }
  0x2b   : > { %2573 = sst [smem:[#allocation8 + $0x1]] (%p3003_p6), %s2894_s23  ;;  %s2895_s26 = smov 8  }
  0x2c   : > { %2574 = sst [smem:[#allocation8 + $0x2]] (%p3003_p6), %s2895_s26  ;;  %s2896_s16 = smov 128  }
  0x2d   : > { %2575 = sst [smem:[#allocation8 + $0x3]] (%p3003_p6), %s2896_s16  ;;  %s248_s14 = scalar_lea.sflag [#allocation4], %s247_s12 }
  0x2e   : > { %2576 = sst [smem:[#allocation8 + $0x4]] (%p3003_p6), %s2896_s16  ;;  %s2897_s15 = smov 131072  }
  0x2f   : > { %s2171_s13 = sshll.u32 %s274_s20, 26  ;;  %2577 = sst [smem:[#allocation8 + $0x5]] (%p3003_p6), %s2895_s26 }
  0x30   : > { %s2172_s29 = sadd.s32 134217728, %s2171_s13 }
  0x31   : > { %2578 = dma.general (%p3003_p6), %s269_s19, 4096, %s283_s8, %s248_s14, %s2897_s15, [#allocation8], %s2172_s29, 0  }
  0x32 PF: > { %p2173_p5 = scmp.ge.s32.totalorder %s2891_s27, 1  ;;  %p303_p7 = scmp.lt.s32.totalorder %s2891_s27, 5 }
  0x34   : > { %p304_p8 = pnand %p2173_p5, %p303_p7 }
  0x36   : > { %307 = sbr.rel (%p304_p8) target bundleno = 2633 (0xa49), region = 44 }
  0x3b   : > { %s309_s23 = sand.u32 1, %s2883_s25  }
  0x3c   : > { %s2174_s10 = sshll.u32 %s309_s23, 8  ;;  %s310_s17 = scalar_lea.sflag [#allocation4], %s309_s23 }
  0x3d   : > { %s3064_s20 = scalar_lea.vmem [#allocation3], %s2174_s10 }
  0x3e   : > { %2858 = dma.done.wait (%p3013_p10), %s310_s17, 4096  }
  0x3f   : > { %2860 = vsyncadd (%p3013_p10), %s310_s17, 4294963200  ;;  %s2176_s26 = sshll.u32 %s2985_s28, 3  ;;  %v2663_v0 = vld [vmem:[%s3734_s1 + $0x8] sm:$0xff]   ;;  %v2664_v1 = vld [vmem:[%s3734_s1] sm:$0xff]   ;;  %vm418_vm0 = vcmask 261120   ;;  %vm512_vm1 = vcmask 64512  }
  0x40   : > { %p348_p6 = scmp.lt.s32.totalorder %s2176_s26, 31  ;;  %2403 = vmatprep.subr.bf16.mxu0 %v2663_v0  ;;  %v2178_v7 = vld [vmem:[%s3735_s2] ss:$0 sm:$0xff]  ;;  %s2898_s15 = smov 96   ;;  %v604_v38 = vld [vmem:[%s3064_s20 + $0x10] sm:$0xff]  ;;  %vm618_vm2 = vcmask 523264  }
  0x41   : > { %2404 = vmatpush3.bf16.msra.mxu0 %v2663_v0  ;;  %s2899_s23 = smov 64   ;;  %s2900_s10 = smov 88   ;;  %v602_v40 = vld [vmem:[%s3064_s20] sm:$0xff]  ;;  %v605_v46 = vld [vmem:[%s3064_s20 + $0x18] sm:$0xff]  ;;  %v603_v47 = vld [vmem:[%s3064_s20 + $0x8] sm:$0xff]  ;;  %vm832_vm3 = vcmask 60416  }
  0x42   : > { %s3776_s26 = smov (!%p348_p6, %s2176_s26), 31  ;;  %2405 = vmatprep.subr.bf16.mxu0 %v2664_v1  ;;  %v608_v56 = vld [vmem:[%s3064_s20 + $0x30] sm:$0xff]  ;;  %v609_v58 = vld [vmem:[%s3064_s20 + $0x38] sm:$0xff]  ;;  %v606_v60 = vld [vmem:[%s3064_s20 + $0x20] sm:$0xff]  ;;  %s2901_s17 = smov 120   ;;  %vm1192_vm4 = vcmask 126016  }
  0x43   : > { %s2177_s18 = sshll.u32 %s3776_s26, 2  ;;  %v607_v63 = vld [vmem:[%s3064_s20 + $0x28] sm:$0xff]  ;;  %s2902_s26 = smov 56   ;;  %vm1552_vm5 = vcmask 191616   ;;  %vm1912_vm6 = vcmask 257216  }
  0x44   : > { %s351_s19 = scalar_lea.vmem %s3733_s0, %s2177_s18  ;;  %s2903_s18 = smov 80  }
  0x45   : > { %v2665_v2 = vld [vmem:[%s351_s19] sm:$0xff]   ;;  %v2666_v3 = vld [vmem:[%s351_s19 + $0x8] sm:$0xff]   ;;  %2406 = vmatpush3.bf16.msra.mxu0 %v2664_v1  ;;  %v2667_v4 = vld [vmem:[%s351_s19 + $0x10] sm:$0xff]   ;;  %s2904_s8 = smov 112   ;;  %s2905_s12 = smov 48  }
  0x46   : > { %2407 = vmatprep.mubr.msk.bf16.mxu0 %vm418_vm0, %v2665_v2  ;;  %v2668_v5 = vld [vmem:[%s351_s19 + $0x18] sm:$0xff]   ;;  %s2906_s19 = smov 72   ;;  %s2907_s9 = smov 104  }
  0x47   : > { %s2908_s16 = smov 40   ;;  %s2910_s13 = smov 16  }
  0x48   : > { %2408 = vmatmul.mubr.msk.bf16.vlgmr.msra.gmra.mxu0 %vm418_vm0, %v2666_v3  ;;  %s2912_s7 = smov [#allocation6]  }
  0x49   : > { %2411 = vmatprep.mubr.msk.bf16.mxu0 %vm418_vm0, %v2667_v4  ;;  %s2807_s14 = sshll.u32 %s2912_s7, 4  ;;  %s2808_s14 = int_to_ptr.vmem [resolvable:$false] %s2807_s14 }
  0x50   : > { %2412 = vmatmul.mubr.msk.bf16.gmra.mxu0 %vm418_vm0, %v2668_v5 }
 0x108   : > { %v2409_v6 = vpop.f32.mrf.mxu0 }
 0x109   : > { %v474_v10 = vadd.f32 %v2409_v6, %v2178_v7 }
 0x10a   : > { %v465_v8 = vpop.f32.mrf.mxu0 }
 0x10b   : > { %v466_v13 = vadd.f32 %v2178_v7, %v465_v8 }
 0x10c   : > { %v2410_v9 = vpop.f32.mrf.mxu0 }
 0x10d   : > { %v477_v11 = vadd.f32 %v2410_v9, %v2178_v7 }
 0x10e   : > { %v468_v12 = vpop.f32.mrf.mxu0 }
 0x10f   : > { %v3087_v14 = vpack.c.bf16 %v477_v11, %v474_v10  ;;  %v469_v15 = vadd.f32 %v2178_v7, %v468_v12 }
 0x110   : > { %v2413_v16 = vpop.f32.mrf.mxu0 }
 0x111   : > { %v3089_v17 = vpack.c.bf16 %v469_v15, %v466_v13  ;;  %506 = vrot.lane.b32.xlu1 %v3087_v14, %s2898_s15  ;;  %v490_v20 = vadd.f32 %v2413_v16, %v2178_v7 }
 0x112   : > { %v481_v18 = vpop.f32.mrf.mxu0 }
 0x113   : > { %2423 = vmatprep.mubr.msk.bf16.mxu1 %vm512_vm1, %v3089_v17  ;;  %v482_v25 = vadd.f32 %v2178_v7, %v481_v18 }
 0x114   : > { %v2414_v19 = vpop.f32.mrf.mxu0 }
 0x115   : > { %v493_v21 = vadd.f32 %v2414_v19, %v2178_v7  ;;  %504 = vrot.lane.b32.xlu1 %v3089_v17, %s2898_s15 }
 0x116   : > { %v484_v22 = vpop.f32.mrf.mxu0 }
 0x117   : > { %v3095_v23 = vpack.c.bf16 %v493_v21, %v490_v20  ;;  %v485_v24 = vadd.f32 %v2178_v7, %v484_v22 }
 0x119   : > { %510 = vrot.lane.b32.xlu0 %v3095_v23, %s2898_s15  ;;  %701 = vrot.lane.b32.xlu1 %v3095_v23, %s2899_s23  ;;  %v3100_v26 = vpack.c.bf16 %v485_v24, %v482_v25 }
 0x11d   : > { %508 = vrot.lane.b32.xlu0 %v3100_v26, %s2898_s15  ;;  %697 = vrot.lane.b32.xlu1 %v3087_v14, %s2899_s23  ;;  %s2809_s15 = scalar_lea.vmem %s2808_s14, 2048 }
 0x121   : > { %699 = vrot.lane.b32.xlu0 %v3100_v26, %s2899_s23  ;;  %855 = vrot.lane.b32.xlu1 %v3095_v23, %s2900_s10 }
 0x183   : > { %v507_v27 = vpop.permute.xlu1 %506 }
 0x184   : > { %v529_v36 = vsel %vm512_vm1, %v507_v27, 0 }
 0x187   : > { %v505_v28 = vpop.permute.xlu1 %504 }
 0x188   : > { %v526_v37 = vsel %vm512_vm1, %v505_v28, 0 }
 0x18b   : > { %v511_v29 = vpop.permute.xlu0 %510  ;;  %v702_v30 = vpop.permute.xlu1 %701 }
 0x18c   : > { %2555 = vmatprep.subr.msk.bf16.mxu1 %vm512_vm1, %v511_v29  ;;  %2431 = vmatprep.subr.bf16.mxu0 %v702_v30  ;;  %v535_v31 = vsel %vm512_vm1, %v511_v29, 0 }
 0x18d   : > { %2416 = vmatpush3.bf16.xpose.msra.mxu1 %v535_v31  ;;  %2432 = vmatpush3.bf16.msra.mxu0 %v702_v30 }
 0x18f   : > { %v509_v32 = vpop.permute.xlu0 %508  ;;  %v698_v35 = vpop.permute.xlu1 %697 }
 0x190   : > { %2556 = vmatprep.subr.msk.bf16.mxu1 %vm512_vm1, %v509_v32  ;;  %v532_v34 = vsel %vm512_vm1, %v509_v32, 0 }
 0x193   : > { %v700_v33 = vpop.permute.xlu0 %699  ;;  %v856_v7 = vpop.permute.xlu1 %855 }
 0x194   : > { %2433 = vmatprep.subr.bf16.mxu0 %v700_v33  ;;  %v879_v30 = vsel %vm512_vm1, %v856_v7, 0 }
 0x195   : > { %2418 = vmatpush3.bf16.xpose.msra.mxu1 %v532_v34  ;;  %2434 = vmatpush3.bf16.msra.mxu0 %v700_v33 }
 0x196   : > { %2557 = vmatprep.subr.msk.bf16.mxu1 %vm512_vm1, %v507_v27  ;;  %2435 = vmatprep.subr.bf16.mxu0 %v698_v35 }
 0x199   : > { %2436 = vmatpush3.bf16.msra.mxu0 %v698_v35 }
 0x19d   : > { %2420 = vmatpush3.bf16.xpose.msra.mxu1 %v529_v36 }
 0x19e   : > { %2558 = vmatprep.subr.msk.bf16.mxu1 %vm512_vm1, %v505_v28 }
 0x1a5   : > { %2422 = vmatpush3.bf16.xpose.msra.mxu1 %v526_v37 }
 0x1ac   : > { %2424 = vmatmul.mubr.msk.bf16.vlgmr.msra.gmra.mxu1 %vm512_vm1, %v3087_v14 }
 0x1ad   : > { %2427 = vmatprep.mubr.msk.bf16.mxu1 %vm512_vm1, %v3100_v26 }
 0x1b4   : > { %2428 = vmatmul.mubr.msk.bf16.gmra.mxu1 %vm512_vm1, %v3095_v23 }
 0x26c   : > { %v2425_v39 = vpop.f32.mrf.mxu1 }
 0x26d   : > { %v612_v41 = vadd.f32 %v2425_v39, %v604_v38 }
 0x26e   : > { %v571_v42 = vpop.f32.mrf.mxu1 }
 0x26f   : > { %v610_v43 = vadd.f32 %v602_v40, %v571_v42  ;;  %v625_v44 = vsel %vm618_vm2, %v612_v41, -inf }
 0x270   : > { %626 = vmax.xlane.f32.xlu0 %v625_v44  ;;  %v2426_v45 = vpop.f32.mrf.mxu1 }
 0x271   : > { %v613_v49 = vadd.f32 %v2426_v45, %v605_v46  ;;  %v619_v51 = vsel %vm618_vm2, %v610_v43, -inf }
 0x272   : > { %v574_v48 = vpop.f32.mrf.mxu1 }
 0x273   : > { %v611_v50 = vadd.f32 %v603_v47, %v574_v48  ;;  %v628_v53 = vsel %vm618_vm2, %v613_v49, -inf }
 0x274   : > { %620 = vmax.xlane.f32.xlu0 %v619_v51  ;;  %v2429_v54 = vpop.f32.mrf.mxu1 }
 0x275   : > { %v622_v52 = vsel %vm618_vm2, %v611_v50, -inf  ;;  %v3137_v59 = vadd.f32 %v2429_v54, %v608_v56 }
 0x276   : > { %623 = vmax.xlane.f32.xlu1 %v622_v52  ;;  %v587_v55 = vpop.f32.mrf.mxu1 }
 0x277   : > { %v3143_v0 = vadd.f32 %v606_v60, %v587_v55  ;;  %v637_v1 = vsel %vm618_vm2, %v3137_v59, -inf }
 0x278   : > { %629 = vmax.xlane.f32.xlu0 %v628_v53  ;;  %v2430_v57 = vpop.f32.mrf.mxu1 }
 0x279   : > { %v3140_v61 = vadd.f32 %v2430_v57, %v609_v58  ;;  %v631_v4 = vsel %vm618_vm2, %v3143_v0, -inf }
 0x27a   : > { %v590_v62 = vpop.f32.mrf.mxu1 }
 0x27b   : > { %v3147_v2 = vadd.f32 %v607_v63, %v590_v62  ;;  %v640_v3 = vsel %vm618_vm2, %v3140_v61, -inf }
 0x27d   : > { %v634_v5 = vsel %vm618_vm2, %v3147_v2, -inf }
 0x287   : > { %853 = vrot.lane.b32.xlu1 %v3100_v26, %s2900_s10 }
 0x28e   : > { %695 = vrot.lane.b32.xlu0 %v3089_v17, %s2899_s23  ;;  %s2911_s23 = smov 24  }
 0x2ab   : > { %638 = vmax.xlane.f32.xlu1 %v637_v1 }
 0x2ad   : > { %641 = vmax.xlane.f32.xlu0 %v640_v3 }
 0x2af   : > { %632 = vmax.xlane.f32.xlu1 %v631_v4 }
 0x2b1   : > { %635 = vmax.xlane.f32.xlu0 %v634_v5 }
 0x2c0   : > { %849 = vrot.lane.b32.xlu1 %v3089_v17, %s2900_s10 }
 0x2c4   : > { %843 = vrot.lane.b32.xlu1 %v3087_v14, %s2901_s17 }
 0x2c7   : > { %851 = vrot.lane.b32.xlu0 %v3087_v14, %s2900_s10  ;;  %s344_s10 = sand.u32 1, %s2871_s22  }
 0x2c8   : > { %847 = vrot.lane.b32.xlu1 %v3095_v23, %s2901_s17  ;;  %s3683_s29 = scalar_lea.sflag [#allocation5], %s344_s10 }
 0x2cb   : > { %841 = vrot.lane.b32.xlu0 %v3089_v17, %s2901_s17 }
 0x2cc   : > { %1045 = vrot.lane.b32.xlu1 %v3095_v23, %s2902_s26 }
 0x2cf   : > { %845 = vrot.lane.b32.xlu0 %v3100_v26, %s2901_s17  ;;  %s2175_s17 = sshll.u32 %s344_s10, 6 }
 0x2d0   : > { %1041 = vrot.lane.b32.xlu1 %v3087_v14, %s2902_s26 }
 0x2d3   : > { %1043 = vrot.lane.b32.xlu0 %v3100_v26, %s2902_s26 }
 0x2d4   : > { %1215 = vrot.lane.b32.xlu1 %v3095_v23, %s2903_s18 }
 0x2f9   : > { %v627_v6 = vpop.xlane.xlu0 %626 }
 0x2fa   : > { %v645_v8 = vsub.f32 %v612_v41, %v627_v6  ;;  %v2211_v6 = vld [vmem:[%s3064_s20 + $0x50] sm:$0xff] }
 0x2fc   : > { %v655_v15 = vmul.f32 1.442695, %v645_v8  ;;  %v2209_v8 = vld [vmem:[%s3064_s20 + $0x40] sm:$0xff] }
 0x2fd   : > { %v621_v9 = vpop.xlane.xlu0 %620 }
 0x2fe   : > { %v643_v10 = vsub.f32 %v610_v43, %v621_v9 }
 0x2ff   : > { %v624_v11 = vpop.xlane.xlu1 %623 }
 0x300   : > { %v651_v12 = vmul.f32 1.442695, %v643_v10  ;;  %v644_v13 = vsub.f32 %v611_v50, %v624_v11 }
 0x301   : > { %v630_v16 = vpop.xlane.xlu0 %629 }
 0x302   : > { %v653_v18 = vmul.f32 1.442695, %v644_v13  ;;  %v646_v19 = vsub.f32 %v613_v49, %v630_v16  ;;  %2675 = vpow2.f32 %v651_v12  ;;  %v2210_v16 = vld [vmem:[%s3064_s20 + $0x48] sm:$0xff] }
 0x303   : > { %v854_v31 = vpop.permute.xlu1 %853 }
 0x304   : > { %2677 = vpow2.f32 %v653_v18  ;;  %v657_v20 = vmul.f32 1.442695, %v646_v19  ;;  %v876_v32 = vsel %vm512_vm1, %v854_v31, 0 }
 0x305   : > { %2679 = vpow2.f32 %v655_v15  ;;  %v696_v21 = vpop.permute.xlu0 %695  ;;  %v2212_v15 = vld [vmem:[%s3064_s20 + $0x58] sm:$0xff] }
 0x306   : > { %2681 = vpow2.f32 %v657_v20  ;;  %2437 = vmatprep.subr.bf16.mxu0 %v696_v21 }
 0x307   : > { %2438 = vmatpush3.bf16.msra.mxu0 %v696_v21 }
 0x308   : > { %2559 = vmatprep.subr.msk.bf16.mxu0 %vm512_vm1, %v856_v7 }
 0x30f   : > { %v3172_v22 = vpop.eup %2675 }
 0x311   : > { %v3174_v24 = vpop.eup %2677 }
 0x312   : > { %v3176_v25 = vpop.eup %2679  ;;  %v691_v27 = vpack.c.bf16 %v3174_v24, %v3172_v22 }
 0x313   : > { %v3180_v28 = vpop.eup %2681 }
 0x314   : > { %v692_v29 = vpack.c.bf16 %v3180_v28, %v3176_v25  ;;  %2439 = vmatprep.mubr.msk.bf16.mxu0 %vm618_vm2, %v691_v27 }
 0x316   : > { %2440 = vmatmul.mubr.msk.bf16.vlgmr.msra.gmra.mxu0 %vm618_vm2, %v692_v29 }
 0x317   : > { %2448 = vmatpush3.bf16.xpose.msra.mxu0 %v879_v30 }
 0x318   : > { %2560 = vmatprep.subr.msk.bf16.mxu0 %vm512_vm1, %v854_v31 }
 0x31f   : > { %2450 = vmatpush3.bf16.xpose.msra.mxu0 %v876_v32  ;;  %v2215_v32 = vld [vmem:[%s3064_s20 + $0x70] sm:$0xff] }
 0x334   : > { %v639_v33 = vpop.xlane.xlu1 %638 }
 0x335   : > { %v649_v36 = vsub.f32 %v3137_v59, %v639_v33 }
 0x336   : > { %v642_v34 = vpop.xlane.xlu0 %641 }
 0x337   : > { %v650_v35 = vsub.f32 %v3140_v61, %v642_v34  ;;  %v663_v43 = vmul.f32 1.442695, %v649_v36  ;;  %v2216_v34 = vld [vmem:[%s3064_s20 + $0x78] sm:$0xff]  ;;  %v2213_v36 = vld [vmem:[%s3064_s20 + $0x60] sm:$0xff] }
 0x338   : > { %v633_v37 = vpop.xlane.xlu1 %632 }
 0x339   : > { %v665_v38 = vmul.f32 1.442695, %v650_v35  ;;  %v647_v39 = vsub.f32 %v3143_v0, %v633_v37 }
 0x33a   : > { %v636_v40 = vpop.xlane.xlu0 %635 }
 0x33b   : > { %v659_v41 = vmul.f32 1.442695, %v647_v39  ;;  %v648_v42 = vsub.f32 %v3147_v2, %v636_v40  ;;  %2683 = vpow2.f32 %v665_v38  ;;  %v2214_v39 = vld [vmem:[%s3064_s20 + $0x68] sm:$0xff] }
 0x33c   : > { %v850_v44 = vpop.permute.xlu1 %849 }
 0x33d   : > { %v661_v45 = vmul.f32 1.442695, %v648_v42  ;;  %2685 = vpow2.f32 %v659_v41  ;;  %v870_v52 = vsel %vm512_vm1, %v850_v44, 0 }
 0x33e   : > { %v852_v46 = vpop.permute.xlu0 %851 }
 0x33f   : > { %2687 = vpow2.f32 %v661_v45  ;;  %2561 = vmatprep.subr.msk.bf16.mxu0 %vm512_vm1, %v852_v46  ;;  %v873_v47 = vsel %vm512_vm1, %v852_v46, 0 }
 0x340   : > { %2689 = vpow2.f32 %v663_v43  ;;  %v844_v48 = vpop.permute.xlu1 %843  ;;  %2452 = vmatpush3.bf16.xpose.msra.mxu0 %v873_v47 }
 0x341   : > { %2562 = vmatprep.subr.msk.bf16.mxu0 %vm512_vm1, %v850_v44 }
 0x342   : > { %v842_v49 = vpop.permute.xlu0 %841 }
 0x344   : > { %v848_v50 = vpop.permute.xlu1 %847 }
 0x346   : > { %v846_v51 = vpop.permute.xlu0 %845 }
 0x348   : > { %v1046_v53 = vpop.permute.xlu1 %1045  ;;  %2454 = vmatpush3.bf16.xpose.msra.mxu0 %v870_v52  ;;  %v3197_v54 = vpop.eup %2683 }
 0x349   : > { %2463 = vmatprep.subr.bf16.mxu1 %v1046_v53 }
 0x34a   : > { %2464 = vmatpush3.bf16.msra.mxu1 %v1046_v53  ;;  %v1044_v55 = vpop.permute.xlu0 %1043  ;;  %v3199_v56 = vpop.eup %2685 }
 0x34b   : > { %2465 = vmatprep.subr.bf16.mxu1 %v1044_v55 }
 0x34c   : > { %v3201_v57 = vpop.eup %2687  ;;  %v1042_v60 = vpop.permute.xlu1 %1041 }
 0x34d   : > { %v3203_v58 = vpop.eup %2689  ;;  %v693_v59 = vpack.c.bf16 %v3201_v57, %v3199_v56 }
 0x34e   : > { %2466 = vmatpush3.bf16.msra.mxu1 %v1044_v55  ;;  %v694_v61 = vpack.c.bf16 %v3197_v54, %v3203_v58 }
 0x34f   : > { %2443 = vmatprep.mubr.msk.bf16.mxu0 %vm618_vm2, %v693_v59  ;;  %2467 = vmatprep.subr.bf16.mxu1 %v1042_v60 }
 0x350   : > { %2444 = vmatmul.mubr.msk.bf16.gmra.mxu0 %vm618_vm2, %v694_v61  ;;  %v1216_v47 = vpop.permute.xlu1 %1215 }
 0x351   : > { %2455 = vmatprep.mubr.msk.bf16.mxu0 %vm512_vm1, %v842_v49 }
 0x352   : > { %2468 = vmatpush3.bf16.msra.mxu1 %v1042_v60 }
 0x358   : > { %2456 = vmatmul.mubr.msk.bf16.vlgmr.msra.gmra.mxu0 %vm512_vm1, %v844_v48 }
 0x359   : > { %2459 = vmatprep.mubr.msk.bf16.mxu0 %vm512_vm1, %v846_v51 }
 0x360   : > { %2460 = vmatmul.mubr.msk.bf16.gmra.mxu0 %vm512_vm1, %v848_v50 }
 0x3d6   : > { %v3215_v62 = vpop.f32.mrf.mxu0 }
 0x3d8   : > { %v3217_v63 = vpop.f32.mrf.mxu0 }
 0x3da   : > { %v3219_v0 = vpop.f32.mrf.mxu0 }
 0x3dc   : > { %v3221_v1 = vpop.f32.mrf.mxu0 }
 0x410   : > { %v3223_v2 = vpop.f32.mrf.mxu0 }
 0x412   : > { %v3225_v3 = vpop.f32.mrf.mxu0 }
 0x414   : > { %v3227_v4 = vpop.f32.mrf.mxu0 }
 0x415   : > { %3750 = vst [vmem:[#allocation16_spill] sm:$0xff] %v3227_v4  ;;  %v2264_v4 = vld [vmem:[%s3064_s20 + $0xf8] sm:$0xff] }
 0x416   : > { %v3229_v5 = vpop.f32.mrf.mxu0 }
 0x417   : > { %3751 = vst [vmem:[#allocation17_spill] sm:$0xff] %v3229_v5 }
 0x418   : > { %v2457_v7 = vpop.f32.mrf.mxu0 }
 0x419   : > { %v957_v9 = vadd.f32 %v2457_v7, %v2211_v6 }
 0x41a   : > { %v915_v10 = vpop.f32.mrf.mxu0 }
 0x41b   : > { %v955_v11 = vadd.f32 %v2209_v8, %v915_v10  ;;  %v969_v12 = vsel %vm618_vm2, %v957_v9, -inf }
 0x41c   : > { %970 = vmax.xlane.f32.xlu0 %v969_v12  ;;  %v2458_v13 = vpop.f32.mrf.mxu0 }
 0x41d   : > { %v958_v19 = vadd.f32 %v2458_v13, %v2212_v15  ;;  %v963_v21 = vsel %vm618_vm2, %v955_v11, -inf  ;;  %v1239_v15 = vsel %vm512_vm1, %v1216_v47, 0 }
 0x41e   : > { %v918_v18 = vpop.f32.mrf.mxu0 }
 0x41f   : > { %v956_v20 = vadd.f32 %v2210_v16, %v918_v18  ;;  %v972_v29 = vsel %vm618_vm2, %v958_v19, -inf }
 0x420   : > { %964 = vmax.xlane.f32.xlu0 %v963_v21  ;;  %v2461_v30 = vpop.f32.mrf.mxu0 }
 0x421   : > { %v966_v27 = vsel %vm618_vm2, %v956_v20, -inf  ;;  %v3245_v35 = vadd.f32 %v2461_v30, %v2215_v32 }
 0x422   : > { %967 = vmax.xlane.f32.xlu1 %v966_v27  ;;  %v931_v31 = vpop.f32.mrf.mxu0 }
 0x423   : > { %v3251_v40 = vadd.f32 %v2213_v36, %v931_v31  ;;  %v981_v41 = vsel %vm618_vm2, %v3245_v35, -inf }
 0x424   : > { %973 = vmax.xlane.f32.xlu0 %v972_v29  ;;  %v2462_v33 = vpop.f32.mrf.mxu0 }
 0x425   : > { %v3248_v37 = vadd.f32 %v2462_v33, %v2216_v34  ;;  %v975_v44 = vsel %vm618_vm2, %v3251_v40, -inf }
 0x426   : > { %v934_v38 = vpop.f32.mrf.mxu0 }
 0x427   : > { %v3255_v42 = vadd.f32 %v2214_v39, %v934_v38  ;;  %v984_v43 = vsel %vm618_vm2, %v3248_v37, -inf }
 0x429   : > { %v978_v45 = vsel %vm618_vm2, %v3255_v42, -inf }
 0x433   : > { %1213 = vrot.lane.b32.xlu1 %v3100_v26, %s2903_s18 }
 0x43a   : > { %1039 = vrot.lane.b32.xlu0 %v3089_v17, %s2902_s26 }
 0x457   : > { %982 = vmax.xlane.f32.xlu1 %v981_v41 }
 0x459   : > { %985 = vmax.xlane.f32.xlu0 %v984_v43 }
 0x45b   : > { %976 = vmax.xlane.f32.xlu1 %v975_v44 }
 0x45d   : > { %979 = vmax.xlane.f32.xlu0 %v978_v45 }
 0x46c   : > { %1209 = vrot.lane.b32.xlu1 %v3089_v17, %s2903_s18 }
 0x470   : > { %1203 = vrot.lane.b32.xlu1 %v3087_v14, %s2904_s8 }
 0x473   : > { %1211 = vrot.lane.b32.xlu0 %v3087_v14, %s2903_s18 }
 0x474   : > { %1207 = vrot.lane.b32.xlu1 %v3095_v23, %s2904_s8 }
 0x477   : > { %1201 = vrot.lane.b32.xlu0 %v3089_v17, %s2904_s8 }
 0x478   : > { %1405 = vrot.lane.b32.xlu1 %v3095_v23, %s2905_s12 }
 0x47b   : > { %1205 = vrot.lane.b32.xlu0 %v3100_v26, %s2904_s8  ;;  %s346_s8 = scalar_lea.vmem [#allocation6], %s2175_s17 }
 0x47c   : > { %1401 = vrot.lane.b32.xlu1 %v3087_v14, %s2905_s12 }
 0x47f   : > { %1403 = vrot.lane.b32.xlu0 %v3100_v26, %s2905_s12 }
 0x480   : > { %1575 = vrot.lane.b32.xlu1 %v3095_v23, %s2906_s19 }
 0x4a5   : > { %v971_v46 = vpop.xlane.xlu0 %970 }
 0x4a6   : > { %v989_v48 = vsub.f32 %v957_v9, %v971_v46 }
 0x4a8   : > { %v999_v55 = vmul.f32 1.442695, %v989_v48 }
 0x4a9   : > { %v965_v49 = vpop.xlane.xlu0 %964 }
 0x4aa   : > { %v987_v50 = vsub.f32 %v955_v11, %v965_v49 }
 0x4ab   : > { %v968_v51 = vpop.xlane.xlu1 %967 }
 0x4ac   : > { %v995_v52 = vmul.f32 1.442695, %v987_v50  ;;  %v988_v53 = vsub.f32 %v956_v20, %v968_v51 }
 0x4ad   : > { %v974_v59 = vpop.xlane.xlu0 %973 }
 0x4ae   : > { %v997_v60 = vmul.f32 1.442695, %v988_v53  ;;  %v990_v61 = vsub.f32 %v958_v19, %v974_v59  ;;  %2691 = vpow2.f32 %v995_v52 }
 0x4af   : > { %v1214_v16 = vpop.permute.xlu1 %1213 }
 0x4b0   : > { %2693 = vpow2.f32 %v997_v60  ;;  %v1001_v6 = vmul.f32 1.442695, %v990_v61  ;;  %v1236_v18 = vsel %vm512_vm1, %v1214_v16, 0 }
 0x4b1   : > { %2695 = vpow2.f32 %v999_v55  ;;  %v1040_v7 = vpop.permute.xlu0 %1039 }
 0x4b2   : > { %2697 = vpow2.f32 %v1001_v6  ;;  %2469 = vmatprep.subr.bf16.mxu1 %v1040_v7 }
 0x4b3   : > { %2470 = vmatpush3.bf16.msra.mxu1 %v1040_v7 }
 0x4b4   : > { %2563 = vmatprep.subr.msk.bf16.mxu1 %vm512_vm1, %v1216_v47 }
 0x4bb   : > { %v3280_v8 = vpop.eup %2691 }
 0x4bd   : > { %v3282_v9 = vpop.eup %2693 }
 0x4be   : > { %v3284_v10 = vpop.eup %2695  ;;  %v1035_v11 = vpack.c.bf16 %v3282_v9, %v3280_v8 }
 0x4bf   : > { %v3288_v12 = vpop.eup %2697 }
 0x4c0   : > { %v1036_v13 = vpack.c.bf16 %v3288_v12, %v3284_v10  ;;  %2471 = vmatprep.mubr.msk.bf16.mxu1 %vm618_vm2, %v1035_v11 }
 0x4c2   : > { %2472 = vmatmul.mubr.msk.bf16.vlgmr.msra.gmra.mxu1 %vm618_vm2, %v1036_v13 }
 0x4c3   : > { %2480 = vmatpush3.bf16.xpose.msra.mxu1 %v1239_v15  ;;  %v2235_v15 = vld [vmem:[%s3064_s20 + $0x90] sm:$0xff] }
 0x4c4   : > { %2564 = vmatprep.subr.msk.bf16.mxu1 %vm512_vm1, %v1214_v16 }
 0x4cb   : > { %2482 = vmatpush3.bf16.xpose.msra.mxu1 %v1236_v18  ;;  %v2233_v18 = vld [vmem:[%s3064_s20 + $0x80] sm:$0xff] }
 0x4e0   : > { %v983_v19 = vpop.xlane.xlu1 %982 }
 0x4e1   : > { %v993_v27 = vsub.f32 %v3245_v35, %v983_v19 }
 0x4e2   : > { %v986_v20 = vpop.xlane.xlu0 %985 }
 0x4e3   : > { %v994_v21 = vsub.f32 %v3248_v37, %v986_v20  ;;  %v1007_v36 = vmul.f32 1.442695, %v993_v27 }
 0x4e4   : > { %v977_v29 = vpop.xlane.xlu1 %976 }
 0x4e5   : > { %v1009_v30 = vmul.f32 1.442695, %v994_v21  ;;  %v991_v31 = vsub.f32 %v3251_v40, %v977_v29 }
 0x4e6   : > { %v980_v32 = vpop.xlane.xlu0 %979 }
 0x4e7   : > { %v1003_v33 = vmul.f32 1.442695, %v991_v31  ;;  %v992_v34 = vsub.f32 %v3255_v42, %v980_v32  ;;  %2699 = vpow2.f32 %v1009_v30  ;;  %v2236_v30 = vld [vmem:[%s3064_s20 + $0x98] sm:$0xff]  ;;  %v2234_v31 = vld [vmem:[%s3064_s20 + $0x88] sm:$0xff] }
 0x4e8   : > { %v1210_v38 = vpop.permute.xlu1 %1209 }
 0x4e9   : > { %v1005_v39 = vmul.f32 1.442695, %v992_v34  ;;  %2701 = vpow2.f32 %v1003_v33  ;;  %v1230_v42 = vsel %vm512_vm1, %v1210_v38, 0 }
 0x4ea   : > { %v1212_v41 = vpop.permute.xlu0 %1211 }
 0x4eb   : > { %2703 = vpow2.f32 %v1005_v39  ;;  %v1233_v43 = vsel %vm512_vm1, %v1212_v41, 0  ;;  %2565 = vmatprep.subr.msk.bf16.mxu1 %vm512_vm1, %v1212_v41 }
 0x4ec   : > { %2705 = vpow2.f32 %v1007_v36  ;;  %v1204_v35 = vpop.permute.xlu1 %1203  ;;  %2484 = vmatpush3.bf16.xpose.msra.mxu1 %v1233_v43 }
 0x4ed   : > { %2566 = vmatprep.subr.msk.bf16.mxu1 %vm512_vm1, %v1210_v38 }
 0x4ee   : > { %v1202_v37 = vpop.permute.xlu0 %1201 }
 0x4f0   : > { %v1208_v40 = vpop.permute.xlu1 %1207 }
 0x4f2   : > { %v1206_v44 = vpop.permute.xlu0 %1205 }
 0x4f4   : > { %v1406_v45 = vpop.permute.xlu1 %1405  ;;  %2486 = vmatpush3.bf16.xpose.msra.mxu1 %v1230_v42  ;;  %v3305_v46 = vpop.eup %2699  ;;  %v2237_v42 = vld [vmem:[%s3064_s20 + $0xa0] sm:$0xff] }
 0x4f5   : > { %2495 = vmatprep.subr.bf16.mxu0 %v1406_v45 }
 0x4f6   : > { %2496 = vmatpush3.bf16.msra.mxu0 %v1406_v45  ;;  %v1404_v47 = vpop.permute.xlu0 %1403  ;;  %v3307_v48 = vpop.eup %2701 }
 0x4f7   : > { %2497 = vmatprep.subr.bf16.mxu0 %v1404_v47 }
 0x4f8   : > { %v3309_v49 = vpop.eup %2703  ;;  %v1402_v52 = vpop.permute.xlu1 %1401 }
 0x4f9   : > { %v3311_v50 = vpop.eup %2705  ;;  %v1037_v51 = vpack.c.bf16 %v3309_v49, %v3307_v48 }
 0x4fa   : > { %2498 = vmatpush3.bf16.msra.mxu0 %v1404_v47  ;;  %v1038_v53 = vpack.c.bf16 %v3305_v46, %v3311_v50 }
 0x4fb   : > { %2475 = vmatprep.mubr.msk.bf16.mxu1 %vm618_vm2, %v1037_v51  ;;  %2499 = vmatprep.subr.bf16.mxu0 %v1402_v52  ;;  %v2238_v51 = vld [vmem:[%s3064_s20 + $0xa8] sm:$0xff] }
 0x4fc   : > { %2476 = vmatmul.mubr.msk.bf16.gmra.mxu1 %vm618_vm2, %v1038_v53 }
 0x4fd   : > { %2487 = vmatprep.mubr.msk.bf16.mxu1 %vm512_vm1, %v1202_v37 }
 0x4fe   : > { %2500 = vmatpush3.bf16.msra.mxu0 %v1402_v52 }
 0x504   : > { %2488 = vmatmul.mubr.msk.bf16.vlgmr.msra.gmra.mxu1 %vm512_vm1, %v1204_v35  ;;  %v2239_v35 = vld [vmem:[%s3064_s20 + $0xb0] sm:$0xff] }
 0x505   : > { %2491 = vmatprep.mubr.msk.bf16.mxu1 %vm512_vm1, %v1206_v44 }
 0x50c   : > { %2492 = vmatmul.mubr.msk.bf16.gmra.mxu1 %vm512_vm1, %v1208_v40  ;;  %v2240_v40 = vld [vmem:[%s3064_s20 + $0xb8] sm:$0xff] }
 0x582   : > { %v3323_v55 = vpop.f32.mrf.mxu1 }
 0x584   : > { %v3325_v59 = vpop.f32.mrf.mxu1 }
 0x586   : > { %v3327_v60 = vpop.f32.mrf.mxu1 }
 0x588   : > { %v3329_v61 = vpop.f32.mrf.mxu1 }
 0x5bc   : > { %v3331_v6 = vpop.f32.mrf.mxu1 }
 0x5be   : > { %v3333_v7 = vpop.f32.mrf.mxu1 }
 0x5c0   : > { %v3335_v11 = vpop.f32.mrf.mxu1 }
 0x5c2   : > { %v3337_v13 = vpop.f32.mrf.mxu1 }
 0x5c4   : > { %v2489_v16 = vpop.f32.mrf.mxu1 }
 0x5c5   : > { %v1317_v19 = vadd.f32 %v2489_v16, %v2235_v15 }
 0x5c6   : > { %v1275_v20 = vpop.f32.mrf.mxu1 }
 0x5c7   : > { %v1315_v21 = vadd.f32 %v2233_v18, %v1275_v20  ;;  %v1329_v27 = vsel %vm618_vm2, %v1317_v19, -inf }
 0x5c8   : > { %1330 = vmax.xlane.f32.xlu0 %v1329_v27  ;;  %v2490_v29 = vpop.f32.mrf.mxu1 }
 0x5c9   : > { %v1318_v33 = vadd.f32 %v2490_v29, %v2236_v30  ;;  %v1323_v36 = vsel %vm618_vm2, %v1315_v21, -inf  ;;  %v1576_v29 = vpop.permute.xlu1 %1575 }
 0x5ca   : > { %v1278_v32 = vpop.f32.mrf.mxu1 }
 0x5cb   : > { %v1316_v34 = vadd.f32 %v2234_v31, %v1278_v32  ;;  %v1332_v39 = vsel %vm618_vm2, %v1318_v33, -inf }
 0x5cc   : > { %1324 = vmax.xlane.f32.xlu0 %v1323_v36  ;;  %v2493_v41 = vpop.f32.mrf.mxu1 }
 0x5cd   : > { %v1326_v38 = vsel %vm618_vm2, %v1316_v34, -inf  ;;  %v3353_v44 = vadd.f32 %v2493_v41, %v2239_v35 }
 0x5ce   : > { %1327 = vmax.xlane.f32.xlu1 %v1326_v38  ;;  %v1291_v43 = vpop.f32.mrf.mxu1 }
 0x5cf   : > { %v1319_v52 = vadd.f32 %v2237_v42, %v1291_v43  ;;  %v1341_v53 = vsel %vm618_vm2, %v3353_v44, -inf }
 0x5d0   : > { %1333 = vmax.xlane.f32.xlu0 %v1332_v39  ;;  %v2494_v37 = vpop.f32.mrf.mxu1 }
 0x5d1   : > { %v1322_v45 = vadd.f32 %v2494_v37, %v2240_v40  ;;  %v1335_v18 = vsel %vm618_vm2, %v1319_v52, -inf }
 0x5d2   : > { %v1294_v47 = vpop.f32.mrf.mxu1 }
 0x5d3   : > { %v3359_v15 = vadd.f32 %v2238_v51, %v1294_v47  ;;  %v1344_v16 = vsel %vm618_vm2, %v1322_v45, -inf  ;;  %v1599_v51 = vsel %vm512_vm1, %v1576_v29, 0 }
 0x5d5   : > { %v1338_v20 = vsel %vm618_vm2, %v3359_v15, -inf }
 0x5df   : > { %1573 = vrot.lane.b32.xlu1 %v3100_v26, %s2906_s19 }
 0x5e6   : > { %1399 = vrot.lane.b32.xlu0 %v3089_v17, %s2905_s12  ;;  %s2071_s12 = sshll.u32 %s346_s8, 4  ;;  %s3674_s12 = int_to_ptr.vmem [resolvable:$true] %s2071_s12 }
 0x5e7   : > { %p2810_p12 = scmp.lt.s32.totalorder %s3674_s12, %s2808_s14 }
 0x603   : > { %1342 = vmax.xlane.f32.xlu1 %v1341_v53 }
 0x605   : > { %1345 = vmax.xlane.f32.xlu0 %v1344_v16 }
 0x607   : > { %1336 = vmax.xlane.f32.xlu1 %v1335_v18 }
 0x609   : > { %1339 = vmax.xlane.f32.xlu0 %v1338_v20 }
 0x618   : > { %1569 = vrot.lane.b32.xlu1 %v3089_v17, %s2906_s19 }
 0x61c   : > { %1563 = vrot.lane.b32.xlu1 %v3087_v14, %s2907_s9 }
 0x61f   : > { %1571 = vrot.lane.b32.xlu0 %v3087_v14, %s2906_s19  ;;  %s2326_s19 = sshll.u32 %s2985_s28, 10  ;;  %s2803_s28 = scalar_lea.vmem %s3674_s12, 1024 }
 0x620   : > { %1567 = vrot.lane.b32.xlu1 %v3095_v23, %s2907_s9  ;;  %p2804_p9 = scmp.ne.s32.totalorder %s3674_s12, %s2803_s28  ;;  %p2811_p13 = scmp.lt.s32.totalorder %s2809_s15, %s2803_s28 }
 0x622   : > { %p2805_p10 = pnand %p2804_p9, %p3031_p2  ;;  %p2812_p0 = por %p2811_p13, %p2810_p12 }
 0x623   : > { %1561 = vrot.lane.b32.xlu0 %v3089_v17, %s2907_s9 }
 0x624   : > { %1765 = vrot.lane.b32.xlu1 %v3095_v23, %s2908_s16  ;;  %p2806_p11 = pneg %p2805_p10 }
 0x626   : > { %p2813_p1 = pnand %p2812_p0, %p2806_p11 }
 0x627   : > { %1565 = vrot.lane.b32.xlu0 %v3100_v26, %s2907_s9 }
 0x651   : > { %v1331_v27 = vpop.xlane.xlu0 %1330 }
 0x652   : > { %v1349_v30 = vsub.f32 %v1317_v19, %v1331_v27 }
 0x654   : > { %v1359_v41 = vmul.f32 1.442695, %v1349_v30 }
 0x655   : > { %v1325_v31 = vpop.xlane.xlu0 %1324 }
 0x656   : > { %v1347_v32 = vsub.f32 %v1315_v21, %v1325_v31 }
 0x657   : > { %v1328_v36 = vpop.xlane.xlu1 %1327 }
 0x658   : > { %v1355_v38 = vmul.f32 1.442695, %v1347_v32  ;;  %v1348_v39 = vsub.f32 %v1316_v34, %v1328_v36 }
 0x659   : > { %v1334_v43 = vpop.xlane.xlu0 %1333 }
 0x65a   : > { %v1357_v35 = vmul.f32 1.442695, %v1348_v39  ;;  %v1350_v37 = vsub.f32 %v1318_v33, %v1334_v43  ;;  %2707 = vpow2.f32 %v1355_v38 }
 0x65b   : > { %v1574_v53 = vpop.permute.xlu1 %1573 }
 0x65c   : > { %2709 = vpow2.f32 %v1357_v35  ;;  %v1361_v40 = vmul.f32 1.442695, %v1350_v37  ;;  %v1596_v16 = vsel %vm512_vm1, %v1574_v53, 0 }
 0x65d   : > { %2711 = vpow2.f32 %v1359_v41  ;;  %v1400_v42 = vpop.permute.xlu0 %1399 }
 0x65e   : > { %2713 = vpow2.f32 %v1361_v40  ;;  %2501 = vmatprep.subr.bf16.mxu0 %v1400_v42 }
 0x65f   : > { %2502 = vmatpush3.bf16.msra.mxu0 %v1400_v42 }
 0x660   : > { %2567 = vmatprep.subr.msk.bf16.mxu0 %vm512_vm1, %v1576_v29 }
 0x667   : > { %v3376_v23 = vpop.eup %2707 }
 0x669   : > { %v3378_v19 = vpop.eup %2709 }
 0x66a   : > { %v3380_v21 = vpop.eup %2711  ;;  %v1395_v34 = vpack.c.bf16 %v3378_v19, %v3376_v23 }
 0x66b   : > { %v3384_v33 = vpop.eup %2713 }
 0x66c   : > { %v1396_v47 = vpack.c.bf16 %v3384_v33, %v3380_v21  ;;  %2503 = vmatprep.mubr.msk.bf16.mxu0 %vm618_vm2, %v1395_v34 }
 0x66e   : > { %2504 = vmatmul.mubr.msk.bf16.vlgmr.msra.gmra.mxu0 %vm618_vm2, %v1396_v47 }
 0x66f   : > { %2512 = vmatpush3.bf16.xpose.msra.mxu0 %v1599_v51 }
 0x670   : > { %2568 = vmatprep.subr.msk.bf16.mxu0 %vm512_vm1, %v1574_v53 }
 0x677   : > { %2514 = vmatpush3.bf16.xpose.msra.mxu0 %v1596_v16 }
 0x68c   : > { %v1343_v18 = vpop.xlane.xlu1 %1342 }
 0x68d   : > { %v1353_v30 = vsub.f32 %v3353_v44, %v1343_v18 }
 0x68e   : > { %v1346_v20 = vpop.xlane.xlu0 %1345 }
 0x68f   : > { %v1354_v27 = vsub.f32 %v1322_v45, %v1346_v20  ;;  %v1367_v41 = vmul.f32 1.442695, %v1353_v30 }
 0x690   : > { %v1337_v31 = vpop.xlane.xlu1 %1336 }
 0x691   : > { %v1369_v32 = vmul.f32 1.442695, %v1354_v27  ;;  %v1351_v36 = vsub.f32 %v1319_v52, %v1337_v31 }
 0x692   : > { %v1340_v38 = vpop.xlane.xlu0 %1339 }
 0x693   : > { %v1363_v39 = vmul.f32 1.442695, %v1351_v36  ;;  %v1352_v29 = vsub.f32 %v3359_v15, %v1340_v38  ;;  %2715 = vpow2.f32 %v1369_v32 }
 0x694   : > { %v1570_v43 = vpop.permute.xlu1 %1569 }
 0x695   : > { %v1365_v35 = vmul.f32 1.442695, %v1352_v29  ;;  %2717 = vpow2.f32 %v1363_v39  ;;  %v1590_v52 = vsel %vm512_vm1, %v1570_v43, 0 }
 0x696   : > { %v1572_v37 = vpop.permute.xlu0 %1571 }
 0x697   : > { %2719 = vpow2.f32 %v1365_v35  ;;  %v1593_v40 = vsel %vm512_vm1, %v1572_v37, 0  ;;  %2569 = vmatprep.subr.msk.bf16.mxu0 %vm512_vm1, %v1572_v37  ;;  %v2257_v35 = vld [vmem:[%s3064_s20 + $0xc0] sm:$0xff] }
 0x698   : > { %2721 = vpow2.f32 %v1367_v41  ;;  %v1564_v44 = vpop.permute.xlu1 %1563  ;;  %2516 = vmatpush3.bf16.xpose.msra.mxu0 %v1593_v40  ;;  %v2259_v41 = vld [vmem:[%s3064_s20 + $0xd0] sm:$0xff] }
 0x699   : > { %2570 = vmatprep.subr.msk.bf16.mxu0 %vm512_vm1, %v1570_v43 }
 0x69a   : > { %v1562_v18 = vpop.permute.xlu0 %1561 }
 0x69c   : > { %v1568_v45 = vpop.permute.xlu1 %1567 }
 0x69e   : > { %v1566_v20 = vpop.permute.xlu0 %1565 }
 0x6a0   : > { %v1766_v15 = vpop.permute.xlu1 %1765  ;;  %2518 = vmatpush3.bf16.xpose.msra.mxu0 %v1590_v52  ;;  %v3399_v42 = vpop.eup %2715 }
 0x6a1   : > { %2527 = vmatprep.subr.bf16.mxu1 %v1766_v15 }
 0x6a2   : > { %2528 = vmatpush3.bf16.msra.mxu1 %v1766_v15  ;;  %v3401_v34 = vpop.eup %2717  ;;  %v2260_v15 = vld [vmem:[%s3064_s20 + $0xd8] sm:$0xff] }
 0x6a4   : > { %v3403_v47 = vpop.eup %2719 }
 0x6a5   : > { %v3405_v51 = vpop.eup %2721  ;;  %v1397_v53 = vpack.c.bf16 %v3403_v47, %v3401_v34 }
 0x6a6   : > { %v1398_v16 = vpack.c.bf16 %v3399_v42, %v3405_v51 }
 0x6a7   : > { %2507 = vmatprep.mubr.msk.bf16.mxu0 %vm618_vm2, %v1397_v53  ;;  %v2258_v53 = vld [vmem:[%s3064_s20 + $0xc8] sm:$0xff] }
 0x6a8   : > { %2508 = vmatmul.mubr.msk.bf16.gmra.mxu0 %vm618_vm2, %v1398_v16 }
 0x6a9   : > { %2519 = vmatprep.mubr.msk.bf16.mxu0 %vm512_vm1, %v1562_v18  ;;  %v2263_v18 = vld [vmem:[%s3064_s20 + $0xf0] sm:$0xff] }
 0x6b0   : > { %2520 = vmatmul.mubr.msk.bf16.vlgmr.msra.gmra.mxu0 %vm512_vm1, %v1564_v44 }
 0x6b1   : > { %2523 = vmatprep.mubr.msk.bf16.mxu0 %vm512_vm1, %v1566_v20 }
 0x6b8   : > { %2524 = vmatmul.mubr.msk.bf16.gmra.mxu0 %vm512_vm1, %v1568_v45 }
 0x72e   : > { %v3417_v27 = vpop.f32.mrf.mxu0 }
 0x730   : > { %v3419_v30 = vpop.f32.mrf.mxu0 }
 0x732   : > { %v3421_v31 = vpop.f32.mrf.mxu0 }
 0x734   : > { %v3423_v32 = vpop.f32.mrf.mxu0 }
 0x768   : > { %v3425_v36 = vpop.f32.mrf.mxu0 }
 0x769   : > { %3752 = vst [vmem:[#allocation18_spill] sm:$0xff] %v3425_v36  ;;  %v2261_v36 = vld [vmem:[%s3064_s20 + $0xe0] sm:$0xff] }
 0x76a   : > { %v3427_v38 = vpop.f32.mrf.mxu0 }
 0x76c   : > { %v3429_v39 = vpop.f32.mrf.mxu0 }
 0x76d   : > { %3753 = vst [vmem:[#allocation19_spill] sm:$0xff] %v3429_v39 }
 0x76e   : > { %v3431_v29 = vpop.f32.mrf.mxu0 }
 0x770   : > { %v2521_v43 = vpop.f32.mrf.mxu0 }
 0x771   : > { %v3435_v37 = vadd.f32 %v2521_v43, %v2259_v41 }
 0x772   : > { %v1635_v40 = vpop.f32.mrf.mxu0 }
 0x773   : > { %v3437_v44 = vadd.f32 %v2257_v35, %v1635_v40  ;;  %v1689_v45 = vsel %vm618_vm2, %v3435_v37, -inf }
 0x774   : > { %1690 = vmax.xlane.f32.xlu0 %v1689_v45  ;;  %v2522_v52 = vpop.f32.mrf.mxu0 }
 0x775   : > { %v3444_v20 = vadd.f32 %v2522_v52, %v2260_v15  ;;  %v1683_v41 = vsel %vm618_vm2, %v3437_v44, -inf }
 0x776   : > { %v1638_v16 = vpop.f32.mrf.mxu0 }
 0x777   : > { %v3446_v39 = vadd.f32 %v2258_v53, %v1638_v16  ;;  %v1692_v52 = vsel %vm618_vm2, %v3444_v20, -inf  ;;  %v2262_v53 = vld [vmem:[%s3064_s20 + $0xe8] sm:$0xff]  ;;  %s2909_s20 = smov 8  }
 0x778   : > { %1684 = vmax.xlane.f32.xlu0 %v1683_v41  ;;  %v2525_v43 = vpop.f32.mrf.mxu0 }
 0x779   : > { %v3450_v35 = vadd.f32 %v2525_v43, %v2263_v18  ;;  %v1686_v40 = vsel %vm618_vm2, %v3446_v39, -inf }
 0x77a   : > { %1687 = vmax.xlane.f32.xlu1 %v1686_v40  ;;  %v1651_v45 = vpop.f32.mrf.mxu0 }
 0x77b   : > { %v3459_v16 = vadd.f32 %v2261_v36, %v1651_v45  ;;  %v1701_v18 = vsel %vm618_vm2, %v3450_v35, -inf  ;;  %v1014_v45 = vsel %vm618_vm2, %v3282_v9, 0.0  ;;  %v1023_v9 = vsel %vm618_vm2, %v3307_v48, 0.0 }
 0x77c   : > { %1693 = vmax.xlane.f32.xlu0 %v1692_v52  ;;  %v2526_v15 = vpop.f32.mrf.mxu0  ;;  %v1032_v48 = vsel %vm618_vm2, %v3305_v46, 0.0 }
 0x77d   : > { %v3461_v5 = vadd.f32 %v2526_v15, %v2264_v4  ;;  %v1695_v52 = vsel %vm618_vm2, %v3459_v16, -inf  ;;  %v1011_v4 = vsel %vm618_vm2, %v3280_v8, 0.0  ;;  %v1017_v15 = vsel %vm618_vm2, %v3284_v10, 0.0 }
 0x77e   : > { %1702 = vmax.xlane.f32.xlu1 %v1701_v18  ;;  %v1654_v41 = vpop.f32.mrf.mxu0  ;;  %v1374_v8 = vsel %vm618_vm2, %v3378_v19, 0.0  ;;  %v1380_v10 = vsel %vm618_vm2, %v3384_v33, 0.0  ;;  %v1383_v19 = vsel %vm618_vm2, %v3401_v34, 0.0 }
 0x77f   : > { %v3465_v43 = vadd.f32 %v2262_v53, %v1654_v41  ;;  %v1704_v40 = vsel %vm618_vm2, %v3461_v5, -inf }
 0x780   : > { %1705 = vmax.xlane.f32.xlu0 %v1704_v40 }
 0x781   : > { %v1698_v36 = vsel %vm618_vm2, %v3465_v43, -inf }
 0x782   : > { %1696 = vmax.xlane.f32.xlu1 %v1695_v52 }
 0x784   : > { %1699 = vmax.xlane.f32.xlu0 %v1698_v36 }
 0x793   : > { %1761 = vrot.lane.b32.xlu1 %v3087_v14, %s2908_s16  ;;  %v1371_v14 = vsel %vm618_vm2, %v3376_v23, 0.0  ;;  %v1026_v23 = vsel %vm618_vm2, %v3309_v49, 0.0 }
 0x797   : > { %1759 = vrot.lane.b32.xlu1 %v3089_v17, %s2908_s16  ;;  %v1020_v17 = vsel %vm618_vm2, %v3288_v12, 0.0  ;;  %v1029_v12 = vsel %vm618_vm2, %v3311_v50, 0.0  ;;  %v1386_v50 = vsel %vm618_vm2, %v3403_v47, 0.0 }
 0x79a   : > { %1763 = vrot.lane.b32.xlu0 %v3100_v26, %s2908_s16  ;;  %v1377_v26 = vsel %vm618_vm2, %v3380_v21, 0.0  ;;  %v1389_v21 = vsel %vm618_vm2, %v3405_v51, 0.0 }
 0x7b9   : > { %1012 = vadd.xlane.f32.xlu0 %v1011_v4 }
 0x7bb   : > { %1015 = vadd.xlane.f32.xlu1 %v1014_v45 }
 0x7bd   : > { %1018 = vadd.xlane.f32.xlu0 %v1017_v15 }
 0x7bf   : > { %1372 = vadd.xlane.f32.xlu1 %v1371_v14 }
 0x7c1   : > { %1021 = vadd.xlane.f32.xlu0 %v1020_v17 }
 0x7c3   : > { %1378 = vadd.xlane.f32.xlu1 %v1377_v26 }
 0x7c5   : > { %1375 = vadd.xlane.f32.xlu0 %v1374_v8 }
 0x7c7   : > { %1024 = vadd.xlane.f32.xlu1 %v1023_v9 }
 0x7c9   : > { %1381 = vadd.xlane.f32.xlu0 %v1380_v10 }
 0x7cb   : > { %1030 = vadd.xlane.f32.xlu1 %v1029_v12 }
 0x7cd   : > { %1027 = vadd.xlane.f32.xlu0 %v1026_v23 }
 0x7cf   : > { %1384 = vadd.xlane.f32.xlu1 %v1383_v19 }
 0x7d1   : > { %1033 = vadd.xlane.f32.xlu0 %v1032_v48 }
 0x7d3   : > { %1390 = vadd.xlane.f32.xlu1 %v1389_v21 }
 0x7d5   : > { %1387 = vadd.xlane.f32.xlu0 %v1386_v50 }
 0x7fd   : > { %v1691_v33 = vpop.xlane.xlu0 %1690 }
 0x7fe   : > { %v1709_v49 = vsub.f32 %v3435_v37, %v1691_v33 }
 0x800   : > { %v1719_v53 = vmul.f32 1.442695, %v1709_v49 }
 0x801   : > { %v1685_v18 = vpop.xlane.xlu0 %1684 }
 0x802   : > { %2723 = vpow2.f32 %v1719_v53  ;;  %v1707_v34 = vsub.f32 %v3437_v44, %v1685_v18 }
 0x803   : > { %v1688_v41 = vpop.xlane.xlu1 %1687 }
 0x804   : > { %v1715_v40 = vmul.f32 1.442695, %v1707_v34  ;;  %v1708_v46 = vsub.f32 %v3446_v39, %v1688_v41 }
 0x805   : > { %v1694_v52 = vpop.xlane.xlu0 %1693 }
 0x806   : > { %2725 = vpow2.f32 %v1715_v40  ;;  %v1717_v51 = vmul.f32 1.442695, %v1708_v46  ;;  %v1710_v36 = vsub.f32 %v3444_v20, %v1694_v52  ;;  %v1392_v46 = vsel %vm618_vm2, %v3399_v42, 0.0 }
 0x807   : > { %v1703_v4 = vpop.xlane.xlu1 %1702 }
 0x808   : > { %2727 = vpow2.f32 %v1717_v51  ;;  %v1721_v47 = vmul.f32 1.442695, %v1710_v36  ;;  %v1713_v45 = vsub.f32 %v3450_v35, %v1703_v4  ;;  %v667_v36 = vsel %vm618_vm2, %v3172_v22, 0.0 }
 0x809   : > { %v1706_v37 = vpop.xlane.xlu0 %1705  ;;  %v670_v22 = vsel %vm618_vm2, %v3174_v24, 0.0 }
 0x80a   : > { %2729 = vpow2.f32 %v1721_v47  ;;  %v1727_v15 = vmul.f32 1.442695, %v1713_v45  ;;  %v1714_v44 = vsub.f32 %v3461_v5, %v1706_v37  ;;  %v673_v45 = vsel %vm618_vm2, %v3176_v25, 0.0 }
 0x80b   : > { %v1697_v14 = vpop.xlane.xlu1 %1696  ;;  %v679_v37 = vsel %vm618_vm2, %v3199_v56, 0.0  ;;  %v682_v25 = vsel %vm618_vm2, %v3201_v57, 0.0  ;;  %v688_v56 = vsel %vm618_vm2, %v3197_v54, 0.0 }
 0x80c   : > { %2731 = vpow2.f32 %v1727_v15  ;;  %v1711_v17 = vsub.f32 %v3459_v16, %v1697_v14  ;;  %v1729_v20 = vmul.f32 1.442695, %v1714_v44  ;;  %v685_v15 = vsel %vm618_vm2, %v3203_v58, 0.0 }
 0x80d   : > { %v1700_v39 = vpop.xlane.xlu0 %1699  ;;  %v676_v14 = vsel %vm618_vm2, %v3180_v28, 0.0 }
 0x80e   : > { %v1723_v26 = vmul.f32 1.442695, %v1711_v17  ;;  %v1712_v8 = vsub.f32 %v3465_v43, %v1700_v39 }
 0x80f   : > { %v2724_v9 = vpop.eup %2723  ;;  %v1762_v35 = vpop.permute.xlu1 %1761 }
 0x810   : > { %2733 = vpow2.f32 %v1723_v26  ;;  %v1725_v10 = vmul.f32 1.442695, %v1712_v8  ;;  %v1737_v12 = vsel %vm618_vm2, %v2724_v9, 0.0 }
 0x811   : > { %1738 = vadd.xlane.f32.xlu1 %v1737_v12  ;;  %v1764_v23 = vpop.permute.xlu0 %1763 }
 0x812   : > { %2735 = vpow2.f32 %v1725_v10  ;;  %2529 = vmatprep.subr.bf16.mxu1 %v1764_v23 }
 0x813   : > { %v2726_v19 = vpop.eup %2725  ;;  %2530 = vmatpush3.bf16.msra.mxu1 %v1764_v23  ;;  %2737 = vpow2.f32 %v1729_v20  ;;  %v1760_v21 = vpop.permute.xlu1 %1759 }
 0x814   : > { %2531 = vmatprep.subr.bf16.mxu1 %v1762_v35  ;;  %v1731_v5 = vsel %vm618_vm2, %v2726_v19, 0.0 }
 0x815   : > { %v2728_v16 = vpop.eup %2727  ;;  %1732 = vadd.xlane.f32.xlu1 %v1731_v5 }
 0x816   : > { %v1755_v43 = vpack.c.bf16 %v2728_v16, %v2726_v19  ;;  %v1734_v18 = vsel %vm618_vm2, %v2728_v16, 0.0 }
 0x817   : > { %v2730_v48 = vpop.eup %2729  ;;  %2532 = vmatpush3.bf16.msra.mxu1 %v1762_v35 }
 0x818   : > { %2533 = vmatprep.subr.bf16.mxu1 %v1760_v21  ;;  %2535 = vmatprep.mubr.msk.bf16.mxu1 %vm618_vm2, %v1755_v43  ;;  %v1740_v50 = vsel %vm618_vm2, %v2730_v48, 0.0  ;;  %v1756_v53 = vpack.c.bf16 %v2730_v48, %v2724_v9 }
 0x819   : > { %v2732_v33 = vpop.eup %2731  ;;  %1741 = vadd.xlane.f32.xlu0 %v1740_v50 }
 0x81a   : > { %v1749_v49 = vsel %vm618_vm2, %v2732_v33, 0.0 }
 0x81b   : > { %1750 = vadd.xlane.f32.xlu1 %v1749_v49  ;;  %2534 = vmatpush3.bf16.msra.mxu1 %v1760_v21 }
 0x81d   : > { %v2734_v34 = vpop.eup %2733  ;;  %1735 = vadd.xlane.f32.xlu0 %v1734_v18 }
 0x81e   : > { %2536 = vmatmul.mubr.msk.bf16.vlgmr.msra.gmra.mxu1 %vm618_vm2, %v1756_v53  ;;  %v1743_v41 = vsel %vm618_vm2, %v2734_v34, 0.0 }
 0x81f   : > { %v2736_v40 = vpop.eup %2735  ;;  %1744 = vadd.xlane.f32.xlu1 %v1743_v41 }
 0x820   : > { %v1757_v52 = vpack.c.bf16 %v2736_v40, %v2734_v34  ;;  %v2738_v51 = vpop.eup %2737  ;;  %v1746_v4 = vsel %vm618_vm2, %v2736_v40, 0.0 }
 0x821   : > { %1393 = vadd.xlane.f32.xlu0 %v1392_v46  ;;  %v1758_v47 = vpack.c.bf16 %v2738_v51, %v2732_v33  ;;  %v1752_v42 = vsel %vm618_vm2, %v2738_v51, 0.0 }
 0x822   : > { %2539 = vmatprep.mubr.msk.bf16.mxu1 %vm618_vm2, %v1757_v52 }
 0x823   : > { %668 = vadd.xlane.f32.xlu1 %v667_v36 }
 0x825   : > { %1747 = vadd.xlane.f32.xlu0 %v1746_v4 }
 0x826   : > { %2540 = vmatmul.mubr.msk.bf16.gmra.mxu1 %vm618_vm2, %v1758_v47 }
 0x827   : > { %674 = vadd.xlane.f32.xlu1 %v673_v45 }
 0x829   : > { %1753 = vadd.xlane.f32.xlu0 %v1752_v42 }
 0x82b   : > { %680 = vadd.xlane.f32.xlu1 %v679_v37 }
 0x82d   : > { %671 = vadd.xlane.f32.xlu0 %v670_v22 }
 0x82f   : > { %686 = vadd.xlane.f32.xlu1 %v685_v15 }
 0x831   : > { %677 = vadd.xlane.f32.xlu0 %v676_v14 }
 0x835   : > { %683 = vadd.xlane.f32.xlu0 %v682_v25 }
 0x839   : > { %689 = vadd.xlane.f32.xlu0 %v688_v56 }
 0x842   : > { %v1013_v44 = vpop.xlane.xlu0 %1012 }
 0x843   : > { %2739 = vrcp.f32 %v1013_v44 }
 0x844   : > { %v1016_v24 = vpop.xlane.xlu1 %1015 }
 0x845   : > { %2741 = vrcp.f32 %v1016_v24 }
 0x846   : > { %v1019_v17 = vpop.xlane.xlu0 %1018 }
 0x847   : > { %2743 = vrcp.f32 %v1019_v17 }
 0x848   : > { %v1373_v58 = vpop.xlane.xlu1 %1372 }
 0x849   : > { %2745 = vrcp.f32 %v1373_v58 }
 0x84a   : > { %v1022_v39 = vpop.xlane.xlu0 %1021 }
 0x84b   : > { %2747 = vrcp.f32 %v1022_v39 }
 0x84c   : > { %v1379_v28 = vpop.xlane.xlu1 %1378 }
 0x84d   : > { %2749 = vrcp.f32 %v1379_v28 }
 0x84e   : > { %v1376_v26 = vpop.xlane.xlu0 %1375 }
 0x84f   : > { %2751 = vrcp.f32 %v1376_v26 }
 0x850   : > { %v2740_v57 = vpop.eup %2739  ;;  %v1025_v8 = vpop.xlane.xlu1 %1024 }
 0x851   : > { %2753 = vrcp.f32 %v1025_v8  ;;  %v1136_v54 = vmul.f32 %v2740_v57, %v3325_v59 }
 0x852   : > { %v2742_v9 = vpop.eup %2741  ;;  %v1382_v20 = vpop.xlane.xlu0 %1381 }
 0x853   : > { %2755 = vrcp.f32 %v1382_v20  ;;  %v2302_v10 = vpack.c.bf16 %v1136_v54, %v1136_v54  ;;  %v1137_v12 = vmul.f32 %v2742_v9, %v3329_v61 }
 0x854   : > { %v2744_v35 = vpop.eup %2743  ;;  %v1031_v23 = vpop.xlane.xlu1 %1030 }
 0x855   : > { %2757 = vrcp.f32 %v1031_v23  ;;  %1168 = vrot.lane.b32.xlu1 %v2302_v10, %s2909_s20  ;;  %v2303_v19 = vpack.c.bf16 %v1137_v12, %v1137_v12  ;;  %v1138_v5 = vmul.f32 %v2744_v35, %v3323_v55 }
 0x856   : > { %v2746_v16 = vpop.eup %2745  ;;  %v1028_v43 = vpop.xlane.xlu0 %1027 }
 0x857   : > { %2759 = vrcp.f32 %v1028_v43  ;;  %1170 = vrot.lane.b32.xlu0 %v2303_v19, %s2909_s20  ;;  %v2304_v59 = vpack.c.bf16 %v1138_v5, %v1138_v5  ;;  %v1496_v48 = vmul.f32 %v2746_v16, %v3419_v30 }
 0x858   : > { %v2748_v21 = vpop.eup %2747  ;;  %v1385_v50 = vpop.xlane.xlu1 %1384 }
 0x859   : > { %2761 = vrcp.f32 %v1385_v50  ;;  %1172 = vrot.lane.b32.xlu1 %v2304_v59, %s2909_s20  ;;  %v2310_v61 = vpack.c.bf16 %v1496_v48, %v1496_v48  ;;  %v1139_v33 = vmul.f32 %v2748_v21, %v3327_v60 }
 0x85a   : > { %v2750_v49 = vpop.eup %2749  ;;  %v1034_v53 = vpop.xlane.xlu0 %1033 }
 0x85b   : > { %2763 = vrcp.f32 %v1034_v53  ;;  %1528 = vrot.lane.b32.xlu0 %v2310_v61, %s2910_s13  ;;  %v2305_v55 = vpack.c.bf16 %v1139_v33, %v1139_v33  ;;  %v1498_v18 = vmul.f32 %v2750_v49, %v3417_v27 }
 0x85c   : > { %v2752_v34 = vpop.eup %2751  ;;  %v3575_v24 = vpop.xlane.xlu1 %1390 }
 0x85d   : > { %1174 = vrot.lane.b32.xlu1 %v2305_v55, %s2909_s20  ;;  %v2312_v30 = vpack.c.bf16 %v1498_v18, %v1498_v18  ;;  %v1497_v41 = vmul.f32 %v2752_v34, %v3423_v32 }
 0x85e   : > { %v2754_v40 = vpop.eup %2753  ;;  %v1388_v46 = vpop.xlane.xlu0 %1387 }
 0x85f   : > { %2765 = vrcp.f32 %v1388_v46  ;;  %1532 = vrot.lane.b32.xlu0 %v2312_v30, %s2910_s13  ;;  %v2311_v60 = vpack.c.bf16 %v1497_v41, %v1497_v41  ;;  %v1140_v52 = vmul.f32 %v2754_v40, %v3333_v7  ;;  %v3754_v46 = vld [vmem:[#allocation17_spill] sm:$0xff] }
 0x860   : > { %v2756_v51 = vpop.eup %2755 }
 0x861   : > { %1530 = vrot.lane.b32.xlu1 %v2311_v60, %s2910_s13  ;;  %v2306_v36 = vpack.c.bf16 %v1140_v52, %v1140_v52  ;;  %v1499_v27 = vmul.f32 %v2756_v51, %v3421_v31 }
 0x862   : > { %v2758_v4 = vpop.eup %2757 }
 0x863   : > { %1176 = vrot.lane.b32.xlu0 %v2306_v36, %s2909_s20  ;;  %v2313_v47 = vpack.c.bf16 %v1499_v27, %v1499_v27  ;;  %v1142_v32 = vmul.f32 %v2758_v4, %v3331_v6  ;;  %v3755_v27 = vld [vmem:[#allocation16_spill] sm:$0xff] }
 0x864   : > { %v2760_v45 = vpop.eup %2759 }
 0x865   : > { %1534 = vrot.lane.b32.xlu1 %v2313_v47, %s2910_s13  ;;  %v2308_v42 = vpack.c.bf16 %v1142_v32, %v1142_v32  ;;  %v1141_v37 = vmul.f32 %v2760_v45, %v3337_v13 }
 0x866   : > { %v2762_v22 = vpop.eup %2761 }
 0x867   : > { %1180 = vrot.lane.b32.xlu0 %v2308_v42, %s2909_s20  ;;  %v2307_v7 = vpack.c.bf16 %v1141_v37, %v1141_v37  ;;  %v1500_v15 = vmul.f32 %v2762_v22, %v3427_v38  ;;  %v2669_v22 = vld [vmem:[%s3737_s4 + $0x8] sm:$0xff]  }
 0x868   : > { %v2764_v14 = vpop.eup %2763  ;;  %2543 = vmatprep.subr.bf16.mxu1 %v2669_v22 }
 0x869   : > { %1178 = vrot.lane.b32.xlu1 %v2307_v7, %s2909_s20  ;;  %v2314_v31 = vpack.c.bf16 %v1500_v15, %v1500_v15  ;;  %v1143_v25 = vmul.f32 %v2764_v14, %v3335_v11  ;;  %2544 = vmatpush3.bf16.msra.mxu1 %v2669_v22 }
 0x86b   : > { %1536 = vrot.lane.b32.xlu0 %v2314_v31, %s2910_s13  ;;  %v2309_v6 = vpack.c.bf16 %v1143_v25, %v1143_v25 }
 0x86c   : > { %v2766_v56 = vpop.eup %2765 }
 0x86d   : > { %1182 = vrot.lane.b32.xlu1 %v2309_v6, %s2909_s20  ;;  %v1501_v13 = vmul.f32 %v2766_v56, %v3431_v29 }
 0x86f   : > { %v2315_v44 = vpack.c.bf16 %v1501_v13, %v1501_v13 }
 0x871   : > { %1538 = vrot.lane.b32.xlu1 %v2315_v44, %s2910_s13 }
 0x89a   : > { %v3577_v38 = vpop.xlane.xlu1 %1738 }
 0x89e   : > { %v3579_v17 = vpop.xlane.xlu1 %1732 }
 0x8a2   : > { %v3581_v58 = vpop.xlane.xlu0 %1741 }
 0x8a4   : > { %v3583_v11 = vpop.xlane.xlu1 %1750 }
 0x8a6   : > { %v3585_v39 = vpop.xlane.xlu0 %1735 }
 0x8a8   : > { %v3587_v28 = vpop.xlane.xlu1 %1744 }
 0x8aa   : > { %v3589_v26 = vpop.xlane.xlu0 %1393 }
 0x8ac   : > { %v669_v29 = vpop.xlane.xlu1 %668 }
 0x8ad   : > { %2767 = vrcp.f32 %v669_v29 }
 0x8ae   : > { %v3591_v57 = vpop.xlane.xlu0 %1747 }
 0x8b0   : > { %v675_v8 = vpop.xlane.xlu1 %674 }
 0x8b1   : > { %2769 = vrcp.f32 %v675_v8 }
 0x8b2   : > { %v3593_v54 = vpop.xlane.xlu0 %1753 }
 0x8b4   : > { %v681_v9 = vpop.xlane.xlu1 %680 }
 0x8b5   : > { %2771 = vrcp.f32 %v681_v9 }
 0x8b6   : > { %v672_v20 = vpop.xlane.xlu0 %671 }
 0x8b7   : > { %2773 = vrcp.f32 %v672_v20  ;;  %v3756_v20 = vld [vmem:[#allocation18_spill] sm:$0xff] }
 0x8b8   : > { %v687_v10 = vpop.xlane.xlu1 %686 }
 0x8b9   : > { %2775 = vrcp.f32 %v687_v10 }
 0x8ba   : > { %v2768_v12 = vpop.eup %2767  ;;  %v678_v35 = vpop.xlane.xlu0 %677 }
 0x8bb   : > { %2777 = vrcp.f32 %v678_v35  ;;  %v792_v23 = vmul.f32 %v2768_v12, %v3217_v63 }
 0x8bd   : > { %v2294_v19 = vpack.c.bf16 %v792_v23, %v792_v23 }
 0x8be   : > { %v2770_v5 = vpop.eup %2769  ;;  %v684_v16 = vpop.xlane.xlu0 %683 }
 0x8bf   : > { %2779 = vrcp.f32 %v684_v16  ;;  %833 = vst.msk [vmem:[#allocation2] sm:$0xf] %vm832_vm3, %v2294_v19  ;;  %v794_v43 = vmul.f32 %v2770_v5, %v3215_v62 }
 0x8c1   : > { %v2296_v59 = vpack.c.bf16 %v794_v43, %v794_v43  ;;  %v3757_v43 = vld [vmem:[#allocation19_spill] sm:$0xff] }
 0x8c2   : > { %v2772_v48 = vpop.eup %2771  ;;  %v690_v21 = vpop.xlane.xlu0 %689 }
 0x8c3   : > { %2781 = vrcp.f32 %v690_v21  ;;  %835 = vst.msk [vmem:[#allocation2 + $0x8] sm:$0xf] %vm832_vm3, %v2296_v59  ;;  %v796_v50 = vmul.f32 %v2772_v48, %v3225_v3 }
 0x8c4   : > { %v2774_v61 = vpop.eup %2773  ;;  %2783 = vrcp.f32 %v3577_v38 }
 0x8c5   : > { %v793_v63 = vmul.f32 %v2774_v61, %v3221_v1  ;;  %v2298_v33 = vpack.c.bf16 %v796_v50, %v796_v50  ;;  %2785 = vrcp.f32 %v3579_v17 }
 0x8c6   : > { %v2776_v49 = vpop.eup %2775  ;;  %2787 = vrcp.f32 %v3575_v24 }
 0x8c7   : > { %v1169_v53 = vpop.permute.xlu1 %1168  ;;  %v2295_v55 = vpack.c.bf16 %v793_v63, %v793_v63  ;;  %837 = vst.msk [vmem:[#allocation2 + $0x10] sm:$0xf] %vm832_vm3, %v2298_v33  ;;  %v798_v62 = vmul.f32 %v2776_v49, %v3223_v2  ;;  %2789 = vrcp.f32 %v3581_v58 }
 0x8c8   : > { %v2778_v18 = vpop.eup %2777  ;;  %1193 = vst.msk [vmem:[#allocation2] sm:$0xf] %vm1192_vm4, %v1169_v53  ;;  %2791 = vrcp.f32 %v3585_v39 }
 0x8c9   : > { %834 = vst.msk [vmem:[#allocation2 + $0x4] sm:$0xf] %vm832_vm3, %v2295_v55  ;;  %v1171_v34 = vpop.permute.xlu0 %1170  ;;  %v795_v3 = vmul.f32 %v2778_v18, %v3219_v0  ;;  %v2300_v30 = vpack.c.bf16 %v798_v62, %v798_v62  ;;  %2793 = vrcp.f32 %v3589_v26 }
 0x8ca   : > { %1194 = vst.msk [vmem:[#allocation2 + $0x4] sm:$0xf] %vm1192_vm4, %v1171_v34  ;;  %2795 = vrcp.f32 %v3587_v28 }
 0x8cb   : > { %v1173_v1 = vpop.permute.xlu1 %1172  ;;  %v2297_v41 = vpack.c.bf16 %v795_v3, %v795_v3  ;;  %839 = vst.msk [vmem:[#allocation2 + $0x18] sm:$0xf] %vm832_vm3, %v2300_v30  ;;  %2797 = vrcp.f32 %v3583_v11  ;;  %v2670_v11 = vld [vmem:[%s3737_s4] sm:$0xff]  }
 0x8cc   : > { %v2780_v40 = vpop.eup %2779  ;;  %1195 = vst.msk [vmem:[#allocation2 + $0x8] sm:$0xf] %vm1192_vm4, %v1173_v1  ;;  %2799 = vrcp.f32 %v3591_v57  ;;  %2545 = vmatprep.subr.bf16.mxu1 %v2670_v11 }
 0x8cd   : > { %v1529_v2 = vpop.permute.xlu0 %1528  ;;  %836 = vst.msk [vmem:[#allocation2 + $0xc] sm:$0xf] %vm832_vm3, %v2297_v41  ;;  %v797_v60 = vmul.f32 %v2780_v40, %v3754_v46  ;;  %2801 = vrcp.f32 %v3593_v54  ;;  %2546 = vmatpush3.bf16.msra.mxu1 %v2670_v11 }
 0x8ce   : > { %1553 = vst.msk [vmem:[#allocation2] sm:$0xf] %vm1552_vm5, %v1529_v2 }
 0x8cf   : > { %v1175_v52 = vpop.permute.xlu1 %1174  ;;  %v2299_v0 = vpack.c.bf16 %v797_v60, %v797_v60 }
 0x8d0   : > { %v2782_v51 = vpop.eup %2781  ;;  %1196 = vst.msk [vmem:[#allocation2 + $0xc] sm:$0xf] %vm1192_vm4, %v1175_v52 }
 0x8d1   : > { %v1533_v36 = vpop.permute.xlu0 %1532  ;;  %838 = vst.msk [vmem:[#allocation2 + $0x14] sm:$0xf] %vm832_vm3, %v2299_v0  ;;  %v799_v4 = vmul.f32 %v2782_v51, %v3755_v27  ;;  %v2784_v14 = vpop.eup %2783 }
 0x8d2   : > { %1555 = vst.msk [vmem:[#allocation2 + $0x8] sm:$0xf] %vm1552_vm5, %v1533_v36  ;;  %v2786_v56 = vpop.eup %2785 }
 0x8d3   : > { %v1531_v47 = vpop.permute.xlu1 %1530  ;;  %v2301_v32 = vpack.c.bf16 %v799_v4, %v799_v4  ;;  %v2788_v44 = vpop.eup %2787 }
 0x8d4   : > { %1554 = vst.msk [vmem:[#allocation2 + $0x4] sm:$0xf] %vm1552_vm5, %v1531_v47  ;;  %v2790_v17 = vpop.eup %2789  ;;  %v1502_v10 = vmul.f32 %v2788_v44, %v3756_v20 }
 0x8d5   : > { %v1177_v45 = vpop.permute.xlu0 %1176  ;;  %840 = vst.msk [vmem:[#allocation2 + $0x1c] sm:$0xf] %vm832_vm3, %v2301_v32  ;;  %v2792_v26 = vpop.eup %2791  ;;  %v2277_v32 = vld [vmem:[%s3738_s5] ss:$0 sm:$0xff] }
 0x8d6   : > { %1197 = vst.msk [vmem:[#allocation2 + $0x10] sm:$0xf] %vm1192_vm4, %v1177_v45  ;;  %v2794_v12 = vpop.eup %2793  ;;  %v2316_v16 = vpack.c.bf16 %v1502_v10, %v1502_v10 }
 0x8d7   : > { %v1535_v42 = vpop.permute.xlu1 %1534  ;;  %v2796_v54 = vpop.eup %2795  ;;  %v1503_v59 = vmul.f32 %v2794_v12, %v3757_v43 }
 0x8d8   : > { %1556 = vst.msk [vmem:[#allocation2 + $0xc] sm:$0xf] %vm1552_vm5, %v1535_v42  ;;  %v2798_v21 = vpop.eup %2797 }
 0x8d9   : > { %v1181_v37 = vpop.permute.xlu0 %1180  ;;  %v2800_v50 = vpop.eup %2799  ;;  %v2317_v53 = vpack.c.bf16 %v1503_v59, %v1503_v59 }
 0x8da   : > { %1199 = vst.msk [vmem:[#allocation2 + $0x18] sm:$0xf] %vm1192_vm4, %v1181_v37  ;;  %v2802_v55 = vpop.eup %2801 }
 0x8db   : > { %v1179_v7 = vpop.permute.xlu1 %1178 }
 0x8dc   : > { %1198 = vst.msk [vmem:[#allocation2 + $0x14] sm:$0xf] %vm1192_vm4, %v1179_v7 }
 0x8dd   : > { %v1537_v15 = vpop.permute.xlu0 %1536 }
 0x8de   : > { %1557 = vst.msk [vmem:[#allocation2 + $0x10] sm:$0xf] %vm1552_vm5, %v1537_v15  ;;  %v2537_v31 = vpop.f32.mrf.mxu1 }
 0x8df   : > { %v1858_v25 = vmul.f32 %v2784_v14, %v2537_v31  ;;  %v1183_v6 = vpop.permute.xlu1 %1182 }
 0x8e0   : > { %1200 = vst.msk [vmem:[#allocation2 + $0x1c] sm:$0xf] %vm1192_vm4, %v1183_v6  ;;  %v1817_v13 = vpop.f32.mrf.mxu1 }
 0x8e1   : > { %v2320_v24 = vpack.c.bf16 %v1858_v25, %v1858_v25  ;;  %v1856_v38 = vmul.f32 %v2786_v56, %v1817_v13 }
 0x8e2   : > { %v2538_v58 = vpop.f32.mrf.mxu1 }
 0x8e3   : > { %v1859_v39 = vmul.f32 %v2790_v17, %v2538_v58  ;;  %1892 = vrot.lane.b32.xlu0 %v2320_v24, %s2911_s23  ;;  %v1539_v28 = vpop.permute.xlu1 %1538  ;;  %v2318_v57 = vpack.c.bf16 %v1856_v38, %v1856_v38 }
 0x8e4   : > { %1558 = vst.msk [vmem:[#allocation2 + $0x14] sm:$0xf] %vm1552_vm5, %v1539_v28  ;;  %v1820_v29 = vpop.f32.mrf.mxu1 }
 0x8e5   : > { %v2321_v8 = vpack.c.bf16 %v1859_v39, %v1859_v39  ;;  %v1857_v9 = vmul.f32 %v2792_v26, %v1820_v29 }
 0x8e6   : > { %v2541_v35 = vpop.f32.mrf.mxu1 }
 0x8e7   : > { %1888 = vrot.lane.b32.xlu0 %v2318_v57, %s2911_s23  ;;  %1894 = vrot.lane.b32.xlu1 %v2321_v8, %s2911_s23  ;;  %v2319_v19 = vpack.c.bf16 %v1857_v9, %v1857_v9  ;;  %v1862_v63 = vmul.f32 %v2798_v21, %v2541_v35 }
 0x8e8   : > { %v1833_v23 = vpop.f32.mrf.mxu1 }
 0x8e9   : > { %v1860_v5 = vmul.f32 %v2796_v54, %v1833_v23  ;;  %v2324_v62 = vpack.c.bf16 %v1862_v63, %v1862_v63 }
 0x8ea   : > { %v2542_v48 = vpop.f32.mrf.mxu1 }
 0x8eb   : > { %1540 = vrot.lane.b32.xlu0 %v2316_v16, %s2910_s13  ;;  %1890 = vrot.lane.b32.xlu1 %v2319_v19, %s2911_s23  ;;  %v2322_v33 = vpack.c.bf16 %v1860_v5, %v1860_v5  ;;  %v1863_v18 = vmul.f32 %v2802_v55, %v2542_v48 }
 0x8ec   : > { %v1836_v61 = vpop.f32.mrf.mxu1 }
 0x8ed   : > { %v1861_v49 = vmul.f32 %v2800_v50, %v1836_v61  ;;  %v2325_v3 = vpack.c.bf16 %v1863_v18, %v1863_v18 }
 0x8ef   : > { %1896 = vrot.lane.b32.xlu0 %v2322_v33, %s2911_s23  ;;  %1542 = vrot.lane.b32.xlu1 %v2317_v53, %s2910_s13  ;;  %v2323_v34 = vpack.c.bf16 %v1861_v49, %v1861_v49  ;;  %s3679_s13 = scalar_lea.hbm %s3739_s6, %s2326_s19 }
 0x8f3   : > { %1900 = vrot.lane.b32.xlu0 %v2324_v62, %s2911_s23  ;;  %1898 = vrot.lane.b32.xlu1 %v2323_v34, %s2911_s23 }
 0x8f7   : > { %1902 = vrot.lane.b32.xlu1 %v2325_v3, %s2911_s23 }
 0x955   : > { %v1893_v30 = vpop.permute.xlu0 %1892 }
 0x956   : > { %1915 = vst.msk [vmem:[#allocation2 + $0x8] sm:$0xf] %vm1912_vm6, %v1893_v30 }
 0x959   : > { %v1895_v1 = vpop.permute.xlu1 %1894  ;;  %v1889_v41 = vpop.permute.xlu0 %1888 }
 0x95a   : > { %1916 = vst.msk [vmem:[#allocation2 + $0xc] sm:$0xf] %vm1912_vm6, %v1895_v1  ;;  %1913 = vst.msk [vmem:[#allocation2] sm:$0xf] %vm1912_vm6, %v1889_v41 }
 0x95d   : > { %v1891_v40 = vpop.permute.xlu1 %1890  ;;  %v1541_v2 = vpop.permute.xlu0 %1540 }
 0x95e   : > { %1914 = vst.msk [vmem:[#allocation2 + $0x4] sm:$0xf] %vm1912_vm6, %v1891_v40 }
 0x95f   : > { %1559 = vst.msk [vmem:[#allocation2 + $0x18] sm:$0xf] %vm1552_vm5, %v1541_v2 }
 0x961   : > { %v1543_v46 = vpop.permute.xlu1 %1542  ;;  %v1897_v60 = vpop.permute.xlu0 %1896  ;;  %v2672_v36 = vld [vmem:[#allocation2 + $0x8] sm:$0xff]  }
 0x962   : > { %1560 = vst.msk [vmem:[#allocation2 + $0x1c] sm:$0xf] %vm1552_vm5, %v1543_v46 }
 0x963   : > { %1917 = vst.msk [vmem:[#allocation2 + $0x10] sm:$0xf] %vm1912_vm6, %v1897_v60 }
 0x965   : > { %v1899_v52 = vpop.permute.xlu1 %1898  ;;  %v1901_v0 = vpop.permute.xlu0 %1900  ;;  %v2671_v51 = vld [vmem:[#allocation2] sm:$0xff]  }
 0x966   : > { %1918 = vst.msk [vmem:[#allocation2 + $0x14] sm:$0xf] %vm1912_vm6, %v1899_v52  ;;  %1919 = vst.msk [vmem:[#allocation2 + $0x18] sm:$0xf] %vm1912_vm6, %v1901_v0  ;;  %2547 = vmatprep.mubr.msk.bf16.mxu1 %vm418_vm0, %v2671_v51 }
 0x967   : > { %2548 = vmatmul.mubr.msk.bf16.vlgmr.msra.gmra.mxu1 %vm418_vm0, %v2672_v36 }
 0x969   : > { %v1903_v27 = vpop.permute.xlu1 %1902 }
 0x96a   : > { %1920 = vst.msk [vmem:[#allocation2 + $0x1c] sm:$0xf] %vm1912_vm6, %v1903_v27 }
 0x96d   : > { %v2673_v4 = vld [vmem:[#allocation2 + $0x10] sm:$0xff]  }
 0x96e   : > { %2551 = vmatprep.mubr.msk.bf16.mxu1 %vm418_vm0, %v2673_v4 }
 0x971   : > { %v2674_v47 = vld [vmem:[#allocation2 + $0x18] sm:$0xff]  }
 0x972   : > { %2552 = vmatmul.mubr.msk.bf16.gmra.mxu1 %vm418_vm0, %v2674_v47 }
 0xa27   : > { %v2549_v45 = vpop.f32.mrf.mxu1 }
 0xa28   : > { %v2027_v42 = vadd.f32 %v2549_v45, %v2277_v32 }
 0xa29   : > { %v2018_v37 = vpop.f32.mrf.mxu1 }
 0xa2a   : > { %2051 = vst [vmem:[%s346_s8 + $0x10] sm:$0xff] %v2027_v42  ;;  %v2019_v22 = vadd.f32 %v2277_v32, %v2018_v37 }
 0xa2b   : > { %v2550_v7 = vpop.f32.mrf.mxu1 }
 0xa2c   : > { %2049 = vst [vmem:[%s346_s8] sm:$0xff] %v2019_v22  ;;  %v2030_v15 = vadd.f32 %v2550_v7, %v2277_v32 }
 0xa2d   : > { %v2021_v14 = vpop.f32.mrf.mxu1 }
 0xa2e   : > { %2052 = vst [vmem:[%s346_s8 + $0x18] sm:$0xff] %v2030_v15  ;;  %v2022_v31 = vadd.f32 %v2277_v32, %v2021_v14 }
 0xa30   : > { %2050 = vst [vmem:[%s346_s8 + $0x8] sm:$0xff] %v2022_v31 }
 0xa32   : > { %v2553_v25 = vpop.f32.mrf.mxu1 }
 0xa33   : > { %v2043_v6 = vadd.f32 %v2553_v25, %v2277_v32 }
 0xa34   : > { %v2034_v56 = vpop.f32.mrf.mxu1 }
 0xa35   : > { %2055 = vst [vmem:[%s346_s8 + $0x30] sm:$0xff] %v2043_v6  ;;  %v2035_v13 = vadd.f32 %v2277_v32, %v2034_v56 }
 0xa36   : > { %v2554_v44 = vpop.f32.mrf.mxu1 }
 0xa37   : > { %2053 = vst [vmem:[%s346_s8 + $0x20] sm:$0xff] %v2035_v13  ;;  %v2046_v24 = vadd.f32 %v2554_v44, %v2277_v32 }
 0xa38   : > { %v2037_v38 = vpop.f32.mrf.mxu1 }
 0xa39   : > { %2056 = vst [vmem:[%s346_s8 + $0x38] sm:$0xff] %v2046_v24  ;;  %v2038_v17 = vadd.f32 %v2277_v32, %v2037_v38 }
 0xa3b   : > { %2054 = vst [vmem:[%s346_s8 + $0x28] sm:$0xff] %v2038_v17 }
 0xa3c   : > { %2816 = shalt.err (!%p2813_p1)
}
 0xa3d   : > { %s2817_s23 = scalar_lea.hbm %s3679_s13, 1024  ;;  %s2821_s26 = scalar_lea.hbm %s3739_s6, 4096 }
 0xa3e   : > { %p2818_p4 = scmp.ne.s32.totalorder %s3679_s13, %s2817_s23  ;;  %p2822_p8 = scmp.lt.s32.totalorder %s3679_s13, %s3739_s6 }
 0xa3f   : > { %p2823_p6 = scmp.lt.s32.totalorder %s2821_s26, %s2817_s23 }
 0xa40   : > { %p2819_p5 = pnand %p2818_p4, %p3031_p2 }
 0xa41   : > { %p2824_p9 = por %p2823_p6, %p2822_p8 }
 0xa42   : > { %p2820_p7 = pneg %p2819_p5 }
 0xa44   : > { %p2825_p10 = pnand %p2824_p9, %p2820_p7 }
 0xa46   : > { %2828 = shalt.err (!%p2825_p10)
}
 0xa47   : > { %s2913_s19 = smov 128  }
 0xa48   : > { %2580 = dma.vmem_to_hbm [thread:$0]  (%p3031_p2), %s3674_s12, 1024, %s3679_s13, %s3683_s29, %s2913_s19, %s2913_s19, %s2909_s20  }
 0xa49 PF: > { %p2586_p11 = scmp.ge.s32.totalorder %s2891_s27, 2  ;;  %s2086_s9 = sand.u32 1, %s2867_s21  }
 0xa4a   : > { %s2087_s16 = scalar_lea.sflag [#allocation5], %s2086_s9 }
 0xa4b   : > { %p2583_p12 = pnand %p2586_p11, %p3035_p3 }
 0xa4d   : > { %p2584_p13 = pneg %p2583_p12 }
 0xa4f   : > { %2862 = dma.done.wait (%p2584_p13), %s2087_s16, 1024  }
 0xa50   : > { %2864 = vsyncadd (%p2584_p13), %s2087_s16, 4294966272  ;;  %s3758_s24 = sld [smem:[#allocation12_spill]]  ;;  %p19_p2 = scmp.ge.s32.totalorder %s2989_s30, 6  }
 0xa51   : > { %s3759_s23 = sld [smem:[#allocation15_spill]]  ;;  %s3762_s21 = smov %s2871_s22 }
 0xa52   : > { %s3760_s28 = sld [smem:[#allocation13_spill]]  ;;  %s3766_s27 = smov %s2989_s30 }
 0xa53   : > { %s3761_s26 = sld [smem:[#allocation14_spill]] }
 0xa54   :  { %21 = sbr.rel (!%p19_p2) target bundleno = 7 (0x7), region = 100 }
 0xa56   : > { %s3763_s22 = smov %s3758_s24  ;;  %s3764_s24 = smov %s2883_s25 }
 0xa58   : > { %s3765_s25 = smov %s3760_s28 }
 0xa59   :  { %2092 = vsyncpa [#allocation4], 1 }
 0xa5a   :  { %2094 = vsyncpa [#allocation4 + $0x1], 1 }
 0xa5b   :  { %2095 = vsyncpa [#allocation5], 1 }
 0xa5c   :  { %2097 = vsyncpa [#allocation5 + $0x1], 1 }

</bundles_post_ra>
